<compile_context>
chip_gen: v5e
topology: v5e:2x2
jax: 0.10.0
libtpu: 0.0.40
codegen_flags: <defaults>
</compile_context>

<pallas_src>
import functools

import jax
import jax.numpy as jnp
from jax.experimental import pallas as pl
from jax.experimental.pallas import tpu as pltpu

EPS = 1e-5  # torch nn.LayerNorm default eps


# ----------------------------- VMEM budget (per generation) -----------------------------

@functools.lru_cache(maxsize=None)
def _vmem_limit_bytes():
    try:
        cap = int(pltpu.get_tpu_info().vmem_capacity_bytes)
    except Exception:
        cap = 64 * 1024 * 1024  # conservative: assume the smallest (v7x, 64 MiB) part
    # leave ~24 MiB headroom for Mosaic internal scratch / value intermediates
    return max(40 * 1024 * 1024, min(cap - 24 * 1024 * 1024, 100 * 1024 * 1024))


def _compiler_params():
    return pltpu.CompilerParams(dimension_semantics=("parallel",),
                                vmem_limit_bytes=_vmem_limit_bytes())


def _resident_spec(shape, single_buffer):
    """Constant-index_map BlockSpec: block stays resident in VMEM across the grid.
    single_buffer=True requests Buffered(1) so resident weights are not
    double-buffered (matters on v7x's 64 MiB VMEM)."""
    index_map = lambda *_: (0,) * len(shape)
    if single_buffer:
        return pl.BlockSpec(shape, index_map,
                            pipeline_mode=pl.Buffered(buffer_count=1))
    return pl.BlockSpec(shape, index_map)


# ----------------------------- shared attention math (one batch element) -----------------------------

def _attention_heads(q, k, v, attn_bias, ctx_ref, num_heads):
    """Per-head softmax attention.  q/k/v are f32 (Sq|Sk, D); the QK^T and PV matmuls
    run with bf16 operands + f32 MXU accumulation.  Each head's context is written
    straight into the (Sq, D) f32 VMEM scratch (no concat, bounded live ranges)."""
    D = q.shape[-1]
    dh = D // num_heads
    for h in range(num_heads):
        lo = h * dh
        qh = q[:, lo:lo + dh].astype(jnp.bfloat16)
        kh = k[:, lo:lo + dh].astype(jnp.bfloat16)
        vh = v[:, lo:lo + dh].astype(jnp.bfloat16)
        s = jax.lax.dot_general(qh, kh, (((1,), (1,)), ((), ())),
                                preferred_element_type=jnp.float32)      # (Sq, Sk)
        if attn_bias is not None:
            s = s + attn_bias
        s = s - jnp.max(s, axis=-1, keepdims=True)
        p = jnp.exp(s)
        p = p * pl.reciprocal(jnp.sum(p, axis=-1, keepdims=True), approx=True)
        ctx_ref[:, lo:lo + dh] = jnp.dot(p.astype(jnp.bfloat16), vh,
                                         preferred_element_type=jnp.float32)


def _out_proj_add_layernorm(x, ctx_ref, wo_ref, bo_ref, g_ref, b_ref, o_ref):
    """Output projection + residual add + LayerNorm epilogue (one fused pass)."""
    attn_out = jnp.dot(ctx_ref[...].astype(jnp.bfloat16), wo_ref[...],
                       preferred_element_type=jnp.float32) + bo_ref[...]
    h = x + attn_out
    mu = jnp.mean(h, axis=-1, keepdims=True)
    var = jnp.mean((h - mu) ** 2, axis=-1, keepdims=True)
    norm = (h - mu) * jax.lax.rsqrt(var + EPS)
    o_ref[0] = (norm * g_ref[...] + b_ref[...]).astype(o_ref.dtype)


# ----------------------------- fused self-attention + Add + LayerNorm -----------------------------

def _self_attn_body(x_ref, wqkv_ref, bqkv_ref, wo_ref, bo_ref, g_ref, b_ref,
                    o_ref, ctx_ref, attn_bias, num_heads):
    x = x_ref[0].astype(jnp.float32)                        # (Sq, D) residual / query input
    D = x.shape[-1]
    # Single fused Q|K|V projection: (Sq, D) x (D, 3D); Q weights pre-scaled by 1/sqrt(dh).
    qkv = jnp.dot(x.astype(jnp.bfloat16), wqkv_ref[...],
                  preferred_element_type=jnp.float32) + bqkv_ref[...]    # (Sq, 3D)
    q, k, v = qkv[:, :D], qkv[:, D:2 * D], qkv[:, 2 * D:]
    _attention_heads(q, k, v, attn_bias, ctx_ref, num_heads)
    _out_proj_add_layernorm(x, ctx_ref, wo_ref, bo_ref, g_ref, b_ref, o_ref)


def _self_attn_kernel(x_ref, wqkv_ref, bqkv_ref, wo_ref, bo_ref, g_ref, b_ref,
                      o_ref, ctx_ref, *, num_heads):
    _self_attn_body(x_ref, wqkv_ref, bqkv_ref, wo_ref, bo_ref, g_ref, b_ref,
                    o_ref, ctx_ref, None, num_heads)


def _self_attn_mask_kernel(x_ref, wqkv_ref, bqkv_ref, wo_ref, bo_ref, g_ref, b_ref,
                           bias_ref, o_ref, ctx_ref, *, num_heads):
    _self_attn_body(x_ref, wqkv_ref, bqkv_ref, wo_ref, bo_ref, g_ref, b_ref,
                    o_ref, ctx_ref, bias_ref[...], num_heads)


# ----------------------------- fused cross-attention + Add + LayerNorm -----------------------------

def _cross_attn_body(x_ref, kv_ref, wq_ref, bq_ref, wkv_ref, bkv_ref,
                     wo_ref, bo_ref, g_ref, b_ref, o_ref, ctx_ref,
                     attn_bias, num_heads):
    x = x_ref[0].astype(jnp.float32)                        # (Sq, D)
    D = x.shape[-1]
    q = jnp.dot(x.astype(jnp.bfloat16), wq_ref[...],
                preferred_element_type=jnp.float32) + bq_ref[...]        # (Sq, D), pre-scaled
    kvp = jnp.dot(kv_ref[0].astype(jnp.bfloat16), wkv_ref[...],
                  preferred_element_type=jnp.float32) + bkv_ref[...]     # (Sk, 2D)
    k, v = kvp[:, :D], kvp[:, D:]
    _attention_heads(q, k, v, attn_bias, ctx_ref, num_heads)
    _out_proj_add_layernorm(x, ctx_ref, wo_ref, bo_ref, g_ref, b_ref, o_ref)


def _cross_attn_kernel(x_ref, kv_ref, wq_ref, bq_ref, wkv_ref, bkv_ref,
                       wo_ref, bo_ref, g_ref, b_ref, o_ref, ctx_ref, *, num_heads):
    _cross_attn_body(x_ref, kv_ref, wq_ref, bq_ref, wkv_ref, bkv_ref,
                     wo_ref, bo_ref, g_ref, b_ref, o_ref, ctx_ref, None, num_heads)


def _cross_attn_mask_kernel(x_ref, kv_ref, wq_ref, bq_ref, wkv_ref, bkv_ref,
                            wo_ref, bo_ref, g_ref, b_ref, bias_ref, o_ref, ctx_ref,
                            *, num_heads):
    _cross_attn_body(x_ref, kv_ref, wq_ref, bq_ref, wkv_ref, bkv_ref,
                     wo_ref, bo_ref, g_ref, b_ref, o_ref, ctx_ref, bias_ref[...],
                     num_heads)


# ----------------------------- fused FFN + LayerNorm kernel -----------------------------

def _ffn_ln_kernel(x_ref, w1_ref, b1_ref, w2_ref, b2_ref, g_ref, b_ref, o_ref):
    xb = x_ref[...].astype(jnp.bfloat16)                                 # (TM, D)
    h = jnp.dot(xb, w1_ref[...], preferred_element_type=jnp.float32) + b1_ref[...]
    h = jnp.maximum(h, 0.0)
    y = jnp.dot(h.astype(jnp.bfloat16), w2_ref[...],
                preferred_element_type=jnp.float32) + b2_ref[...]
    mu = jnp.mean(y, axis=-1, keepdims=True)
    var = jnp.mean((y - mu) ** 2, axis=-1, keepdims=True)
    norm = (y - mu) * jax.lax.rsqrt(var + EPS)
    o_ref[...] = (norm * g_ref[...] + b_ref[...]).astype(o_ref.dtype)


# ------------------------------------- wrappers -------------------------------------

def _mask_to_bias(mask):
    m = jnp.asarray(mask, bool)
    if m.ndim != 2:
        # TODO(synk): per-batch / per-head (3-D/4-D) attention masks not supported.
        raise NotImplementedError("only 2-D (Sq, Sk) masks are supported")
    return jnp.where(m, 0.0, -1e9).astype(jnp.float32)   # finite fill (matches reference)


def self_mha_add_layernorm(x, p, mask, num_heads, ln_g, ln_b):
    """LayerNorm(x + SelfAttn(x, mask)) as one fused pallas_call (grid over batch)."""
    B, Sq, D = x.shape
    dh = D // num_heads
    scale = 1.0 / (dh ** 0.5)

    # one-time weight prep: fold 1/sqrt(dh) into Q weights/bias, fuse Q|K|V, cast bf16
    wqkv = jnp.concatenate([p["wq"] * scale, p["wk"], p["wv"]], axis=1).astype(jnp.bfloat16)
    bqkv = jnp.concatenate([p["bq"] * scale, p["bk"], p["bv"]]).reshape(1, 3 * D).astype(jnp.float32)
    wo = p["wo"].astype(jnp.bfloat16)
    bo = p["bo"].reshape(1, D).astype(jnp.float32)
    g = ln_g.reshape(1, D).astype(jnp.float32)
    b = ln_b.reshape(1, D).astype(jnp.float32)

    bias2d = None if mask is None else _mask_to_bias(mask)

    def run(single_buffer):
        res = lambda shape: _resident_spec(shape, single_buffer)
        in_specs = [pl.BlockSpec((1, Sq, D), lambda i: (i, 0, 0)),
                    res((D, 3 * D)), res((1, 3 * D)),
                    res((D, D)), res((1, D)), res((1, D)), res((1, D))]
        args = [x, wqkv, bqkv, wo, bo, g, b]
        if bias2d is None:
            kern = functools.partial(_self_attn_kernel, num_heads=num_heads)
        else:
            in_specs.append(res((Sq, Sq)))
            args.append(bias2d)
            kern = functools.partial(_self_attn_mask_kernel, num_heads=num_heads)
        return pl.pallas_call(
            kern,
            out_shape=jax.ShapeDtypeStruct((B, Sq, D), x.dtype),
            grid=(B,),
            in_specs=in_specs,
            out_specs=pl.BlockSpec((1, Sq, D), lambda i: (i, 0, 0)),
            scratch_shapes=[pltpu.VMEM((Sq, D), jnp.float32)],
            compiler_params=_compiler_params(),
        )(*args)

    try:
        return run(True)
    except Exception:       # Buffered(1) unsupported on this JAX -> default double buffering
        return run(False)


def cross_mha_add_layernorm(x, kv, p, mask, num_heads, ln_g, ln_b):
    """LayerNorm(x + CrossAttn(x, kv, mask)) as one fused pallas_call (grid over batch)."""
    B, Sq, D = x.shape
    Sk = kv.shape[1]
    dh = D // num_heads
    scale = 1.0 / (dh ** 0.5)

    wq = (p["wq"] * scale).astype(jnp.bfloat16)
    bq = (p["bq"] * scale).reshape(1, D).astype(jnp.float32)
    wkv = jnp.concatenate([p["wk"], p["wv"]], axis=1).astype(jnp.bfloat16)
    bkv = jnp.concatenate([p["bk"], p["bv"]]).reshape(1, 2 * D).astype(jnp.float32)
    wo = p["wo"].astype(jnp.bfloat16)
    bo = p["bo"].reshape(1, D).astype(jnp.float32)
    g = ln_g.reshape(1, D).astype(jnp.float32)
    b = ln_b.reshape(1, D).astype(jnp.float32)

    bias2d = None if mask is None else _mask_to_bias(mask)

    def run(single_buffer):
        res = lambda shape: _resident_spec(shape, single_buffer)
        in_specs = [pl.BlockSpec((1, Sq, D), lambda i: (i, 0, 0)),
                    pl.BlockSpec((1, Sk, D), lambda i: (i, 0, 0)),
                    res((D, D)), res((1, D)),
                    res((D, 2 * D)), res((1, 2 * D)),
                    res((D, D)), res((1, D)), res((1, D)), res((1, D))]
        args = [x, kv, wq, bq, wkv, bkv, wo, bo, g, b]
        if bias2d is None:
            kern = functools.partial(_cross_attn_kernel, num_heads=num_heads)
        else:
            in_specs.append(res((Sq, Sk)))
            args.append(bias2d)
            kern = functools.partial(_cross_attn_mask_kernel, num_heads=num_heads)
        return pl.pallas_call(
            kern,
            out_shape=jax.ShapeDtypeStruct((B, Sq, D), x.dtype),
            grid=(B,),
            in_specs=in_specs,
            out_specs=pl.BlockSpec((1, Sq, D), lambda i: (i, 0, 0)),
            scratch_shapes=[pltpu.VMEM((Sq, D), jnp.float32)],
            compiler_params=_compiler_params(),
        )(*args)

    try:
        return run(True)
    except Exception:
        return run(False)


def _pick_row_tile(n, f):
    # cap TM so the (TM, F) f32 post-ReLU intermediate stays a modest VMEM slice
    budget = _vmem_limit_bytes() // 6
    cap = max(8, budget // max(4 * f, 1))
    for t in (1024, 512, 256, 128, 64, 32, 16, 8):
        if t <= cap and n % t == 0:
            return t
    return n  # whole axis (full-dim block)


def ffn_layernorm(x, p, ln_g, ln_b):
    """LayerNorm3(FFN(x)) as one fused pallas_call (grid over row tiles, weights resident).

    TODO(synk): F-axis tiling (accumulator + LN epilogue under pl.when) for very large
    ff_dim on the 64-MiB v7x part is not implemented."""
    B, S, D = x.shape
    N = B * S
    F = p["w1"].shape[1]
    TM = _pick_row_tile(N, F)

    w1 = p["w1"].astype(jnp.bfloat16)
    w2 = p["w2"].astype(jnp.bfloat16)
    b1 = p["b1"].reshape(1, F).astype(jnp.float32)
    b2 = p["b2"].reshape(1, D).astype(jnp.float32)
    g = ln_g.reshape(1, D).astype(jnp.float32)
    b = ln_b.reshape(1, D).astype(jnp.float32)

    def run(single_buffer):
        res = lambda shape: _resident_spec(shape, single_buffer)
        return pl.pallas_call(
            _ffn_ln_kernel,
            out_shape=jax.ShapeDtypeStruct((N, D), x.dtype),
            grid=(N // TM,),
            in_specs=[pl.BlockSpec((TM, D), lambda i: (i, 0)),
                      res((D, F)), res((1, F)), res((F, D)), res((1, D)),
                      res((1, D)), res((1, D))],
            out_specs=pl.BlockSpec((TM, D), lambda i: (i, 0)),
            compiler_params=_compiler_params(),
        )(x.reshape(N, D), w1, b1, w2, b2, g, b)

    try:
        out = run(True)
    except Exception:
        out = run(False)
    return out.reshape(B, S, D)


def decoder_layer(x, enc_out, params, num_heads, self_mask=None, cross_mask=None):
    # dropout1/2/3 are identity (inference mode)
    x = self_mha_add_layernorm(x, params["self_attn"], self_mask, num_heads,
                               params["ln1_g"], params["ln1_b"])
    x = cross_mha_add_layernorm(x, enc_out, params["cross_attn"], cross_mask, num_heads,
                                params["ln2_g"], params["ln2_b"])
    x = ffn_layernorm(x, params["ffn"], params["ln3_g"], params["ln3_b"])
    return x


# ------------------------------ reference (pure JAX, bf16 projection precision) ------------------------------

def _bmm(a, b):
    return jnp.dot(a.astype(jnp.bfloat16), b.astype(jnp.bfloat16),
                   preferred_element_type=jnp.float32)


def _ref_mha(x, kv, p, mask, H):
    B, Sq, D = x.shape
    Sk = kv.shape[1]
    dh = D // H
    q = _bmm(x, p["wq"]) + p["bq"]
    k = _bmm(kv, p["wk"]) + p["bk"]
    v = _bmm(kv, p["wv"]) + p["bv"]
    q = q.reshape(B, Sq, H, dh).transpose(0, 2, 1, 3) * (1.0 / dh ** 0.5)
    k = k.reshape(B, Sk, H, dh).transpose(0, 2, 1, 3)
    v = v.reshape(B, Sk, H, dh).transpose(0, 2, 1, 3)
    s = jnp.einsum("bhqd,bhkd->bhqk", q, k)
    if mask is not None:
        s = s + jnp.where(jnp.asarray(mask, bool), 0.0, -1e9)
    p_attn = jax.nn.softmax(s, axis=-1)
    ctx = jnp.einsum("bhqk,bhkd->bhqd", p_attn, v).transpose(0, 2, 1, 3).reshape(B, Sq, D)
    return _bmm(ctx, p["wo"]) + p["bo"]


def _ref_ln(h, g, b):
    mu = jnp.mean(h, axis=-1, keepdims=True)
    var = jnp.mean((h - mu) ** 2, axis=-1, keepdims=True)
    return (h - mu) * jax.lax.rsqrt(var + EPS) * g + b


def _ref_decoder(x, enc, params, H, self_mask, cross_mask):
    x = _ref_ln(x + _ref_mha(x, x, params["self_attn"], self_mask, H),
                params["ln1_g"], params["ln1_b"])
    x = _ref_ln(x + _ref_mha(x, enc, params["cross_attn"], cross_mask, H),
                params["ln2_g"], params["ln2_b"])
    p = params["ffn"]
    h = jnp.maximum(_bmm(x, p["w1"]) + p["b1"], 0.0)
    y = _bmm(h, p["w2"]) + p["b2"]
    return _ref_ln(y, params["ln3_g"], params["ln3_b"])


# ------------------------------------ main ------------------------------------

def init_params(key, D, H, F):
    def dense(k, din, dout):
        return 0.02 * jax.random.normal(k, (din, dout), jnp.float32)

    keys = jax.random.split(key, 12)
    mha1 = dict(wq=dense(keys[0], D, D), wk=dense(keys[1], D, D),
                wv=dense(keys[2], D, D), wo=dense(keys[3], D, D),
                bq=jnp.zeros((D,)), bk=jnp.zeros((D,)),
                bv=jnp.zeros((D,)), bo=jnp.zeros((D,)))
    mha2 = dict(wq=dense(keys[4], D, D), wk=dense(keys[5], D, D),
                wv=dense(keys[6], D, D), wo=dense(keys[7], D, D),
                bq=jnp.zeros((D,)), bk=jnp.zeros((D,)),
                bv=jnp.zeros((D,)), bo=jnp.zeros((D,)))
    ffn = dict(w1=dense(keys[8], D, F), b1=0.01 * jax.random.normal(keys[9], (F,)),
               w2=dense(keys[10], F, D), b2=0.01 * jax.random.normal(keys[11], (D,)))
    return dict(self_attn=mha1, cross_attn=mha2, ffn=ffn,
                ln1_g=jnp.ones((D,)), ln1_b=jnp.zeros((D,)),
                ln2_g=jnp.ones((D,)), ln2_b=jnp.zeros((D,)),
                ln3_g=jnp.ones((D,)), ln3_b=jnp.zeros((D,)))


if __name__ == "__main__":
    # small, but lane-friendly demo shapes (D and F multiples of 128)
    B, S_dec, S_enc, D, H, F = 2, 8, 16, 128, 4, 256
    key = jax.random.PRNGKey(0)
    k_x, k_enc, k_p = jax.random.split(key, 3)

    x = jax.random.normal(k_x, (B, S_dec, D), jnp.float32)
    enc_out = jax.random.normal(k_enc, (B, S_enc, D), jnp.float32)
    params = init_params(k_p, D, H, F)

    # causal self-attention mask (True = attend), no cross mask
    self_mask = jnp.tril(jnp.ones((S_dec, S_dec), bool))

    out = decoder_layer(x, enc_out, params, H, self_mask=self_mask, cross_mask=None)
    out = jax.block_until_ready(out)

    ref = _ref_decoder(x, enc_out, params, H, self_mask, None)
    assert out.shape == (B, S_dec, D)
    assert jnp.allclose(out, ref, atol=1e-2, rtol=1e-2), "mismatch vs JAX reference"

    print("KERNEL_OK")
</pallas_src>

<mosaic_0001>
module attributes {stable_mosaic.version = 11 : i64} {
  func.func @_self_attn_mask_kernel(%arg0: i32, %arg1: memref<1x8x128xf32, #tpu.memory_space<vmem>>, %arg2: memref<128x384xbf16, #tpu.memory_space<vmem>>, %arg3: memref<1x384xf32, #tpu.memory_space<vmem>>, %arg4: memref<128x128xbf16, #tpu.memory_space<vmem>>, %arg5: memref<1x128xf32, #tpu.memory_space<vmem>>, %arg6: memref<1x128xf32, #tpu.memory_space<vmem>>, %arg7: memref<1x128xf32, #tpu.memory_space<vmem>>, %arg8: memref<8x8xf32, #tpu.memory_space<vmem>>, %arg9: memref<1x8x128xf32, #tpu.memory_space<vmem>>, %arg10: memref<8x128xf32, #tpu.memory_space<vmem>>) attributes {dimension_semantics = [#tpu.dimension_semantics<parallel>], iteration_bounds = array<i64: 2>, scalar_prefetch = 0 : i64, scratch_operands = 1 : i64, tpu.core_type = #tpu.core_type<tc>, window_params = [{transform_indices = @transform_0, window_bounds = array<i64: 1, 8, 128>}, {pipeline_mode = #tpu.pipeline_mode<synchronous>, transform_indices = @transform_1, window_bounds = array<i64: 128, 384>}, {pipeline_mode = #tpu.pipeline_mode<synchronous>, transform_indices = @transform_2, window_bounds = array<i64: 1, 384>}, {pipeline_mode = #tpu.pipeline_mode<synchronous>, transform_indices = @transform_3, window_bounds = array<i64: 128, 128>}, {pipeline_mode = #tpu.pipeline_mode<synchronous>, transform_indices = @transform_4, window_bounds = array<i64: 1, 128>}, {pipeline_mode = #tpu.pipeline_mode<synchronous>, transform_indices = @transform_5, window_bounds = array<i64: 1, 128>}, {pipeline_mode = #tpu.pipeline_mode<synchronous>, transform_indices = @transform_6, window_bounds = array<i64: 1, 128>}, {pipeline_mode = #tpu.pipeline_mode<synchronous>, transform_indices = @transform_7, window_bounds = array<i64: 8, 8>}, {transform_indices = @transform_8, window_bounds = array<i64: 1, 8, 128>}]} {
    %c0 = arith.constant 0 : index
    %c0_0 = arith.constant 0 : index
    %0 = vector.load %arg8[%c0, %c0_0] : memref<8x8xf32, #tpu.memory_space<vmem>>, vector<8x8xf32>
    %c0_1 = arith.constant 0 : index
    %c0_2 = arith.constant 0 : index
    %c0_3 = arith.constant 0 : index
    %1 = vector.load %arg1[%c0_1, %c0_2, %c0_3] : memref<1x8x128xf32, #tpu.memory_space<vmem>>, vector<1x8x128xf32>
    %2 = vector.shape_cast %1 : vector<1x8x128xf32> to vector<8x128xf32>
    %3 = arith.truncf %2 : vector<8x128xf32> to vector<8x128xbf16>
    %c0_4 = arith.constant 0 : index
    %c0_5 = arith.constant 0 : index
    %4 = vector.load %arg2[%c0_4, %c0_5] : memref<128x384xbf16, #tpu.memory_space<vmem>>, vector<128x384xbf16>
    %cst = arith.constant dense<0.000000e+00> : vector<8x384xf32>
    %5 = tpu.matmul %3, %4, %cst {dimension_numbers = #tpu.dot_dimension_numbers<[1], [0], [0], [1], [0, 0, 1, 1], [], []>} : vector<8x128xbf16>, vector<128x384xbf16>, vector<8x384xf32> -> vector<8x384xf32>
    %c0_6 = arith.constant 0 : index
    %c0_7 = arith.constant 0 : index
    %6 = vector.load %arg3[%c0_6, %c0_7] : memref<1x384xf32, #tpu.memory_space<vmem>>, vector<1x384xf32>
    %7 = vector.broadcast %6 : vector<1x384xf32> to vector<8x384xf32>
    %8 = arith.addf %5, %7 : vector<8x384xf32>
    %9 = vector.extract_strided_slice %8 {offsets = [0, 0], sizes = [8, 128], strides = [1, 1]} : vector<8x384xf32> to vector<8x128xf32>
    %10 = vector.extract_strided_slice %8 {offsets = [0, 128], sizes = [8, 128], strides = [1, 1]} : vector<8x384xf32> to vector<8x128xf32>
    %11 = vector.extract_strided_slice %8 {offsets = [0, 256], sizes = [8, 128], strides = [1, 1]} : vector<8x384xf32> to vector<8x128xf32>
    %12 = vector.extract_strided_slice %9 {offsets = [0, 0], sizes = [8, 32], strides = [1, 1]} : vector<8x128xf32> to vector<8x32xf32>
    %13 = arith.truncf %12 : vector<8x32xf32> to vector<8x32xbf16>
    %14 = vector.extract_strided_slice %10 {offsets = [0, 0], sizes = [8, 32], strides = [1, 1]} : vector<8x128xf32> to vector<8x32xf32>
    %15 = arith.truncf %14 : vector<8x32xf32> to vector<8x32xbf16>
    %16 = vector.extract_strided_slice %11 {offsets = [0, 0], sizes = [8, 32], strides = [1, 1]} : vector<8x128xf32> to vector<8x32xf32>
    %17 = arith.truncf %16 : vector<8x32xf32> to vector<8x32xbf16>
    %cst_8 = arith.constant dense<0.000000e+00> : vector<8x8xf32>
    %18 = tpu.matmul %13, %15, %cst_8 {dimension_numbers = #tpu.dot_dimension_numbers<[1], [1], [0], [0], [0, 0, 1, 0], [], []>} : vector<8x32xbf16>, vector<8x32xbf16>, vector<8x8xf32> -> vector<8x8xf32>
    %19 = arith.addf %18, %0 : vector<8x8xf32>
    %cst_9 = arith.constant dense<0xFF800000> : vector<8xf32>
    %20 = vector.multi_reduction <maximumf>, %19, %cst_9 [1] : vector<8x8xf32> to vector<8xf32>
    %21 = vector.shape_cast %20 : vector<8xf32> to vector<8x1xf32>
    %22 = vector.broadcast %21 : vector<8x1xf32> to vector<8x8xf32>
    %23 = arith.subf %19, %22 : vector<8x8xf32>
    %24 = math.exp %23 : vector<8x8xf32>
    %cst_10 = arith.constant dense<0.000000e+00> : vector<8xf32>
    %25 = vector.multi_reduction <add>, %24, %cst_10 [1] : vector<8x8xf32> to vector<8xf32>
    %26 = vector.shape_cast %25 : vector<8xf32> to vector<8x1xf32>
    %27 = tpu.reciprocal %26 {approx = true} : vector<8x1xf32> -> vector<8x1xf32>
    %28 = vector.broadcast %27 : vector<8x1xf32> to vector<8x8xf32>
    %29 = arith.mulf %24, %28 : vector<8x8xf32>
    %30 = arith.truncf %29 : vector<8x8xf32> to vector<8x8xbf16>
    %cst_11 = arith.constant dense<0.000000e+00> : vector<8x32xf32>
    %31 = tpu.matmul %30, %17, %cst_11 {dimension_numbers = #tpu.dot_dimension_numbers<[1], [0], [0], [1], [0, 0, 1, 1], [], []>} : vector<8x8xbf16>, vector<8x32xbf16>, vector<8x32xf32> -> vector<8x32xf32>
    %c0_12 = arith.constant 0 : index
    %c0_13 = arith.constant 0 : index
    %32 = vector.load %arg10[%c0_12, %c0_13] : memref<8x128xf32, #tpu.memory_space<vmem>>, vector<8x32xf32>
    tpu.vector_store %arg10[%c0_12, %c0_13], %31 {strides = array<i32>} : memref<8x128xf32, #tpu.memory_space<vmem>>, vector<8x32xf32>,
    %33 = vector.extract_strided_slice %9 {offsets = [0, 32], sizes = [8, 32], strides = [1, 1]} : vector<8x128xf32> to vector<8x32xf32>
    %34 = arith.truncf %33 : vector<8x32xf32> to vector<8x32xbf16>
    %35 = vector.extract_strided_slice %10 {offsets = [0, 32], sizes = [8, 32], strides = [1, 1]} : vector<8x128xf32> to vector<8x32xf32>
    %36 = arith.truncf %35 : vector<8x32xf32> to vector<8x32xbf16>
    %37 = vector.extract_strided_slice %11 {offsets = [0, 32], sizes = [8, 32], strides = [1, 1]} : vector<8x128xf32> to vector<8x32xf32>
    %38 = arith.truncf %37 : vector<8x32xf32> to vector<8x32xbf16>
    %cst_14 = arith.constant dense<0.000000e+00> : vector<8x8xf32>
    %39 = tpu.matmul %34, %36, %cst_14 {dimension_numbers = #tpu.dot_dimension_numbers<[1], [1], [0], [0], [0, 0, 1, 0], [], []>} : vector<8x32xbf16>, vector<8x32xbf16>, vector<8x8xf32> -> vector<8x8xf32>
    %40 = arith.addf %39, %0 : vector<8x8xf32>
    %cst_15 = arith.constant dense<0xFF800000> : vector<8xf32>
    %41 = vector.multi_reduction <maximumf>, %40, %cst_15 [1] : vector<8x8xf32> to vector<8xf32>
    %42 = vector.shape_cast %41 : vector<8xf32> to vector<8x1xf32>
    %43 = vector.broadcast %42 : vector<8x1xf32> to vector<8x8xf32>
    %44 = arith.subf %40, %43 : vector<8x8xf32>
    %45 = math.exp %44 : vector<8x8xf32>
    %cst_16 = arith.constant dense<0.000000e+00> : vector<8xf32>
    %46 = vector.multi_reduction <add>, %45, %cst_16 [1] : vector<8x8xf32> to vector<8xf32>
    %47 = vector.shape_cast %46 : vector<8xf32> to vector<8x1xf32>
    %48 = tpu.reciprocal %47 {approx = true} : vector<8x1xf32> -> vector<8x1xf32>
    %49 = vector.broadcast %48 : vector<8x1xf32> to vector<8x8xf32>
    %50 = arith.mulf %45, %49 : vector<8x8xf32>
    %51 = arith.truncf %50 : vector<8x8xf32> to vector<8x8xbf16>
    %cst_17 = arith.constant dense<0.000000e+00> : vector<8x32xf32>
    %52 = tpu.matmul %51, %38, %cst_17 {dimension_numbers = #tpu.dot_dimension_numbers<[1], [0], [0], [1], [0, 0, 1, 1], [], []>} : vector<8x8xbf16>, vector<8x32xbf16>, vector<8x32xf32> -> vector<8x32xf32>
    %c0_18 = arith.constant 0 : index
    %c32 = arith.constant 32 : index
    %53 = vector.load %arg10[%c0_18, %c32] : memref<8x128xf32, #tpu.memory_space<vmem>>, vector<8x32xf32>
    tpu.vector_store %arg10[%c0_18, %c32], %52 {strides = array<i32>} : memref<8x128xf32, #tpu.memory_space<vmem>>, vector<8x32xf32>,
    %54 = vector.extract_strided_slice %9 {offsets = [0, 64], sizes = [8, 32], strides = [1, 1]} : vector<8x128xf32> to vector<8x32xf32>
    %55 = arith.truncf %54 : vector<8x32xf32> to vector<8x32xbf16>
    %56 = vector.extract_strided_slice %10 {offsets = [0, 64], sizes = [8, 32], strides = [1, 1]} : vector<8x128xf32> to vector<8x32xf32>
    %57 = arith.truncf %56 : vector<8x32xf32> to vector<8x32xbf16>
    %58 = vector.extract_strided_slice %11 {offsets = [0, 64], sizes = [8, 32], strides = [1, 1]} : vector<8x128xf32> to vector<8x32xf32>
    %59 = arith.truncf %58 : vector<8x32xf32> to vector<8x32xbf16>
    %cst_19 = arith.constant dense<0.000000e+00> : vector<8x8xf32>
    %60 = tpu.matmul %55, %57, %cst_19 {dimension_numbers = #tpu.dot_dimension_numbers<[1], [1], [0], [0], [0, 0, 1, 0], [], []>} : vector<8x32xbf16>, vector<8x32xbf16>, vector<8x8xf32> -> vector<8x8xf32>
    %61 = arith.addf %60, %0 : vector<8x8xf32>
    %cst_20 = arith.constant dense<0xFF800000> : vector<8xf32>
    %62 = vector.multi_reduction <maximumf>, %61, %cst_20 [1] : vector<8x8xf32> to vector<8xf32>
    %63 = vector.shape_cast %62 : vector<8xf32> to vector<8x1xf32>
    %64 = vector.broadcast %63 : vector<8x1xf32> to vector<8x8xf32>
    %65 = arith.subf %61, %64 : vector<8x8xf32>
    %66 = math.exp %65 : vector<8x8xf32>
    %cst_21 = arith.constant dense<0.000000e+00> : vector<8xf32>
    %67 = vector.multi_reduction <add>, %66, %cst_21 [1] : vector<8x8xf32> to vector<8xf32>
    %68 = vector.shape_cast %67 : vector<8xf32> to vector<8x1xf32>
    %69 = tpu.reciprocal %68 {approx = true} : vector<8x1xf32> -> vector<8x1xf32>
    %70 = vector.broadcast %69 : vector<8x1xf32> to vector<8x8xf32>
    %71 = arith.mulf %66, %70 : vector<8x8xf32>
    %72 = arith.truncf %71 : vector<8x8xf32> to vector<8x8xbf16>
    %cst_22 = arith.constant dense<0.000000e+00> : vector<8x32xf32>
    %73 = tpu.matmul %72, %59, %cst_22 {dimension_numbers = #tpu.dot_dimension_numbers<[1], [0], [0], [1], [0, 0, 1, 1], [], []>} : vector<8x8xbf16>, vector<8x32xbf16>, vector<8x32xf32> -> vector<8x32xf32>
    %c0_23 = arith.constant 0 : index
    %c64 = arith.constant 64 : index
    %74 = vector.load %arg10[%c0_23, %c64] : memref<8x128xf32, #tpu.memory_space<vmem>>, vector<8x32xf32>
    tpu.vector_store %arg10[%c0_23, %c64], %73 {strides = array<i32>} : memref<8x128xf32, #tpu.memory_space<vmem>>, vector<8x32xf32>,
    %75 = vector.extract_strided_slice %9 {offsets = [0, 96], sizes = [8, 32], strides = [1, 1]} : vector<8x128xf32> to vector<8x32xf32>
    %76 = arith.truncf %75 : vector<8x32xf32> to vector<8x32xbf16>
    %77 = vector.extract_strided_slice %10 {offsets = [0, 96], sizes = [8, 32], strides = [1, 1]} : vector<8x128xf32> to vector<8x32xf32>
    %78 = arith.truncf %77 : vector<8x32xf32> to vector<8x32xbf16>
    %79 = vector.extract_strided_slice %11 {offsets = [0, 96], sizes = [8, 32], strides = [1, 1]} : vector<8x128xf32> to vector<8x32xf32>
    %80 = arith.truncf %79 : vector<8x32xf32> to vector<8x32xbf16>
    %cst_24 = arith.constant dense<0.000000e+00> : vector<8x8xf32>
    %81 = tpu.matmul %76, %78, %cst_24 {dimension_numbers = #tpu.dot_dimension_numbers<[1], [1], [0], [0], [0, 0, 1, 0], [], []>} : vector<8x32xbf16>, vector<8x32xbf16>, vector<8x8xf32> -> vector<8x8xf32>
    %82 = arith.addf %81, %0 : vector<8x8xf32>
    %cst_25 = arith.constant dense<0xFF800000> : vector<8xf32>
    %83 = vector.multi_reduction <maximumf>, %82, %cst_25 [1] : vector<8x8xf32> to vector<8xf32>
    %84 = vector.shape_cast %83 : vector<8xf32> to vector<8x1xf32>
    %85 = vector.broadcast %84 : vector<8x1xf32> to vector<8x8xf32>
    %86 = arith.subf %82, %85 : vector<8x8xf32>
    %87 = math.exp %86 : vector<8x8xf32>
    %cst_26 = arith.constant dense<0.000000e+00> : vector<8xf32>
    %88 = vector.multi_reduction <add>, %87, %cst_26 [1] : vector<8x8xf32> to vector<8xf32>
    %89 = vector.shape_cast %88 : vector<8xf32> to vector<8x1xf32>
    %90 = tpu.reciprocal %89 {approx = true} : vector<8x1xf32> -> vector<8x1xf32>
    %91 = vector.broadcast %90 : vector<8x1xf32> to vector<8x8xf32>
    %92 = arith.mulf %87, %91 : vector<8x8xf32>
    %93 = arith.truncf %92 : vector<8x8xf32> to vector<8x8xbf16>
    %cst_27 = arith.constant dense<0.000000e+00> : vector<8x32xf32>
    %94 = tpu.matmul %93, %80, %cst_27 {dimension_numbers = #tpu.dot_dimension_numbers<[1], [0], [0], [1], [0, 0, 1, 1], [], []>} : vector<8x8xbf16>, vector<8x32xbf16>, vector<8x32xf32> -> vector<8x32xf32>
    %c0_28 = arith.constant 0 : index
    %c96 = arith.constant 96 : index
    %95 = vector.load %arg10[%c0_28, %c96] : memref<8x128xf32, #tpu.memory_space<vmem>>, vector<8x32xf32>
    tpu.vector_store %arg10[%c0_28, %c96], %94 {strides = array<i32>} : memref<8x128xf32, #tpu.memory_space<vmem>>, vector<8x32xf32>,
    %c0_29 = arith.constant 0 : index
    %c0_30 = arith.constant 0 : index
    %96 = vector.load %arg10[%c0_29, %c0_30] : memref<8x128xf32, #tpu.memory_space<vmem>>, vector<8x128xf32>
    %97 = arith.truncf %96 : vector<8x128xf32> to vector<8x128xbf16>
    %c0_31 = arith.constant 0 : index
    %c0_32 = arith.constant 0 : index
    %98 = vector.load %arg4[%c0_31, %c0_32] : memref<128x128xbf16, #tpu.memory_space<vmem>>, vector<128x128xbf16>
    %cst_33 = arith.constant dense<0.000000e+00> : vector<8x128xf32>
    %99 = tpu.matmul %97, %98, %cst_33 {dimension_numbers = #tpu.dot_dimension_numbers<[1], [0], [0], [1], [0, 0, 1, 1], [], []>} : vector<8x128xbf16>, vector<128x128xbf16>, vector<8x128xf32> -> vector<8x128xf32>
    %c0_34 = arith.constant 0 : index
    %c0_35 = arith.constant 0 : index
    %100 = vector.load %arg5[%c0_34, %c0_35] : memref<1x128xf32, #tpu.memory_space<vmem>>, vector<1x128xf32>
    %101 = vector.broadcast %100 : vector<1x128xf32> to vector<8x128xf32>
    %102 = arith.addf %99, %101 : vector<8x128xf32>
    %103 = arith.addf %2, %102 : vector<8x128xf32>
    %cst_36 = arith.constant dense<0.000000e+00> : vector<8xf32>
    %104 = vector.multi_reduction <add>, %103, %cst_36 [1] : vector<8x128xf32> to vector<8xf32>
    %105 = vector.shape_cast %104 : vector<8xf32> to vector<8x1xf32>
    %cst_37 = arith.constant 1.280000e+02 : f32
    %106 = vector.broadcast %cst_37 : f32 to vector<8x1xf32>
    %107 = arith.divf %105, %106 : vector<8x1xf32>
    %108 = vector.broadcast %107 : vector<8x1xf32> to vector<8x128xf32>
    %109 = arith.subf %103, %108 : vector<8x128xf32>
    %110 = arith.mulf %109, %109 : vector<8x128xf32>
    %cst_38 = arith.constant dense<0.000000e+00> : vector<8xf32>
    %111 = vector.multi_reduction <add>, %110, %cst_38 [1] : vector<8x128xf32> to vector<8xf32>
    %112 = vector.shape_cast %111 : vector<8xf32> to vector<8x1xf32>
    %cst_39 = arith.constant 1.280000e+02 : f32
    %113 = vector.broadcast %cst_39 : f32 to vector<8x1xf32>
    %114 = arith.divf %112, %113 : vector<8x1xf32>
    %115 = vector.broadcast %107 : vector<8x1xf32> to vector<8x128xf32>
    %116 = arith.subf %103, %115 : vector<8x128xf32>
    %cst_40 = arith.constant 9.99999974E-6 : f32
    %117 = vector.broadcast %cst_40 : f32 to vector<8x1xf32>
    %118 = arith.addf %114, %117 : vector<8x1xf32>
    %119 = math.rsqrt %118 : vector<8x1xf32>
    %120 = vector.broadcast %119 : vector<8x1xf32> to vector<8x128xf32>
    %121 = arith.mulf %116, %120 : vector<8x128xf32>
    %c0_41 = arith.constant 0 : index
    %c0_42 = arith.constant 0 : index
    %122 = vector.load %arg6[%c0_41, %c0_42] : memref<1x128xf32, #tpu.memory_space<vmem>>, vector<1x128xf32>
    %123 = vector.broadcast %122 : vector<1x128xf32> to vector<8x128xf32>
    %124 = arith.mulf %121, %123 : vector<8x128xf32>
    %c0_43 = arith.constant 0 : index
    %c0_44 = arith.constant 0 : index
    %125 = vector.load %arg7[%c0_43, %c0_44] : memref<1x128xf32, #tpu.memory_space<vmem>>, vector<1x128xf32>
    %126 = vector.broadcast %125 : vector<1x128xf32> to vector<8x128xf32>
    %127 = arith.addf %124, %126 : vector<8x128xf32>
    %c0_45 = arith.constant 0 : index
    %c0_46 = arith.constant 0 : index
    %c0_47 = arith.constant 0 : index
    %128 = vector.load %arg9[%c0_45, %c0_46, %c0_47] : memref<1x8x128xf32, #tpu.memory_space<vmem>>, vector<1x8x128xf32>
    %129 = vector.shape_cast %128 : vector<1x8x128xf32> to vector<8x128xf32>
    %130 = vector.shape_cast %127 : vector<8x128xf32> to vector<1x8x128xf32>
    tpu.vector_store %arg9[%c0_45, %c0_46, %c0_47], %130 {strides = array<i32>} : memref<1x8x128xf32, #tpu.memory_space<vmem>>, vector<1x8x128xf32>,
    return
  }
  func.func @transform_0(%arg0: i32) -> (i32, i32, i32) {
    %c0_i32 = arith.constant 0 : i32
    %c0_i32_0 = arith.constant 0 : i32
    %c0_i32_1 = arith.constant 0 : i32
    return %arg0, %c0_i32, %c0_i32_0 : i32, i32, i32
  }
  func.func @transform_1(%arg0: i32) -> (i32, i32) {
    %c0_i32 = arith.constant 0 : i32
    %c0_i32_0 = arith.constant 0 : i32
    %c0_i32_1 = arith.constant 0 : i32
    return %c0_i32, %c0_i32_0 : i32, i32
  }
  func.func @transform_2(%arg0: i32) -> (i32, i32) {
    %c0_i32 = arith.constant 0 : i32
    %c0_i32_0 = arith.constant 0 : i32
    %c0_i32_1 = arith.constant 0 : i32
    return %c0_i32, %c0_i32_0 : i32, i32
  }
  func.func @transform_3(%arg0: i32) -> (i32, i32) {
    %c0_i32 = arith.constant 0 : i32
    %c0_i32_0 = arith.constant 0 : i32
    %c0_i32_1 = arith.constant 0 : i32
    return %c0_i32, %c0_i32_0 : i32, i32
  }
  func.func @transform_4(%arg0: i32) -> (i32, i32) {
    %c0_i32 = arith.constant 0 : i32
    %c0_i32_0 = arith.constant 0 : i32
    %c0_i32_1 = arith.constant 0 : i32
    return %c0_i32, %c0_i32_0 : i32, i32
  }
  func.func @transform_5(%arg0: i32) -> (i32, i32) {
    %c0_i32 = arith.constant 0 : i32
    %c0_i32_0 = arith.constant 0 : i32
    %c0_i32_1 = arith.constant 0 : i32
    return %c0_i32, %c0_i32_0 : i32, i32
  }
  func.func @transform_6(%arg0: i32) -> (i32, i32) {
    %c0_i32 = arith.constant 0 : i32
    %c0_i32_0 = arith.constant 0 : i32
    %c0_i32_1 = arith.constant 0 : i32
    return %c0_i32, %c0_i32_0 : i32, i32
  }
  func.func @transform_7(%arg0: i32) -> (i32, i32) {
    %c0_i32 = arith.constant 0 : i32
    %c0_i32_0 = arith.constant 0 : i32
    %c0_i32_1 = arith.constant 0 : i32
    return %c0_i32, %c0_i32_0 : i32, i32
  }
  func.func @transform_8(%arg0: i32) -> (i32, i32, i32) {
    %c0_i32 = arith.constant 0 : i32
    %c0_i32_0 = arith.constant 0 : i32
    %c0_i32_1 = arith.constant 0 : i32
    return %arg0, %c0_i32, %c0_i32_0 : i32, i32, i32
  }
}

module attributes {stable_mosaic.version = 11 : i64} {
  func.func @_self_attn_mask_kernel(%arg0: i32, %arg1: memref<1x8x128xf32, #tpu.memory_space<vmem>>, %arg2: memref<128x384xbf16, #tpu.memory_space<vmem>>, %arg3: memref<1x384xf32, #tpu.memory_space<vmem>>, %arg4: memref<128x128xbf16, #tpu.memory_space<vmem>>, %arg5: memref<1x128xf32, #tpu.memory_space<vmem>>, %arg6: memref<1x128xf32, #tpu.memory_space<vmem>>, %arg7: memref<1x128xf32, #tpu.memory_space<vmem>>, %arg8: memref<8x8xf32, #tpu.memory_space<vmem>>, %arg9: memref<1x8x128xf32, #tpu.memory_space<vmem>>, %arg10: memref<8x128xf32, #tpu.memory_space<vmem>>) attributes {dimension_semantics = [#tpu.dimension_semantics<parallel>], iteration_bounds = array<i64: 2>, scalar_prefetch = 0 : i64, scratch_operands = 1 : i64, tpu.core_type = #tpu.core_type<tc>, window_params = [{transform_indices = @transform_0, window_bounds = array<i64: 1, 8, 128>}, {pipeline_mode = #tpu.pipeline_mode<synchronous>, transform_indices = @transform_1, window_bounds = array<i64: 128, 384>}, {pipeline_mode = #tpu.pipeline_mode<synchronous>, transform_indices = @transform_2, window_bounds = array<i64: 1, 384>}, {pipeline_mode = #tpu.pipeline_mode<synchronous>, transform_indices = @transform_3, window_bounds = array<i64: 128, 128>}, {pipeline_mode = #tpu.pipeline_mode<synchronous>, transform_indices = @transform_4, window_bounds = array<i64: 1, 128>}, {pipeline_mode = #tpu.pipeline_mode<synchronous>, transform_indices = @transform_5, window_bounds = array<i64: 1, 128>}, {pipeline_mode = #tpu.pipeline_mode<synchronous>, transform_indices = @transform_6, window_bounds = array<i64: 1, 128>}, {pipeline_mode = #tpu.pipeline_mode<synchronous>, transform_indices = @transform_7, window_bounds = array<i64: 8, 8>}, {transform_indices = @transform_8, window_bounds = array<i64: 1, 8, 128>}]} {
    %c0 = arith.constant 0 : index
    %c0_0 = arith.constant 0 : index
    %0 = vector.load %arg8[%c0, %c0_0] : memref<8x8xf32, #tpu.memory_space<vmem>>, vector<8x8xf32>
    %c0_1 = arith.constant 0 : index
    %c0_2 = arith.constant 0 : index
    %c0_3 = arith.constant 0 : index
    %1 = vector.load %arg1[%c0_1, %c0_2, %c0_3] : memref<1x8x128xf32, #tpu.memory_space<vmem>>, vector<1x8x128xf32>
    %2 = vector.shape_cast %1 : vector<1x8x128xf32> to vector<8x128xf32>
    %3 = arith.truncf %2 : vector<8x128xf32> to vector<8x128xbf16>
    %c0_4 = arith.constant 0 : index
    %c0_5 = arith.constant 0 : index
    %4 = vector.load %arg2[%c0_4, %c0_5] : memref<128x384xbf16, #tpu.memory_space<vmem>>, vector<128x384xbf16>
    %cst = arith.constant dense<0.000000e+00> : vector<8x384xf32>
    %5 = tpu.matmul %3, %4, %cst {dimension_numbers = #tpu.dot_dimension_numbers<[1], [0], [0], [1], [0, 0, 1, 1], [], []>} : vector<8x128xbf16>, vector<128x384xbf16>, vector<8x384xf32> -> vector<8x384xf32>
    %c0_6 = arith.constant 0 : index
    %c0_7 = arith.constant 0 : index
    %6 = vector.load %arg3[%c0_6, %c0_7] : memref<1x384xf32, #tpu.memory_space<vmem>>, vector<1x384xf32>
    %7 = vector.broadcast %6 : vector<1x384xf32> to vector<8x384xf32>
    %8 = arith.addf %5, %7 : vector<8x384xf32>
    %9 = vector.extract_strided_slice %8 {offsets = [0, 0], sizes = [8, 128], strides = [1, 1]} : vector<8x384xf32> to vector<8x128xf32>
    %10 = vector.extract_strided_slice %8 {offsets = [0, 128], sizes = [8, 128], strides = [1, 1]} : vector<8x384xf32> to vector<8x128xf32>
    %11 = vector.extract_strided_slice %8 {offsets = [0, 256], sizes = [8, 128], strides = [1, 1]} : vector<8x384xf32> to vector<8x128xf32>
    %12 = vector.extract_strided_slice %9 {offsets = [0, 0], sizes = [8, 32], strides = [1, 1]} : vector<8x128xf32> to vector<8x32xf32>
    %13 = arith.truncf %12 : vector<8x32xf32> to vector<8x32xbf16>
    %14 = vector.extract_strided_slice %10 {offsets = [0, 0], sizes = [8, 32], strides = [1, 1]} : vector<8x128xf32> to vector<8x32xf32>
    %15 = arith.truncf %14 : vector<8x32xf32> to vector<8x32xbf16>
    %16 = vector.extract_strided_slice %11 {offsets = [0, 0], sizes = [8, 32], strides = [1, 1]} : vector<8x128xf32> to vector<8x32xf32>
    %17 = arith.truncf %16 : vector<8x32xf32> to vector<8x32xbf16>
    %cst_8 = arith.constant dense<0.000000e+00> : vector<8x8xf32>
    %18 = tpu.matmul %13, %15, %cst_8 {dimension_numbers = #tpu.dot_dimension_numbers<[1], [1], [0], [0], [0, 0, 1, 0], [], []>} : vector<8x32xbf16>, vector<8x32xbf16>, vector<8x8xf32> -> vector<8x8xf32>
    %19 = arith.addf %18, %0 : vector<8x8xf32>
    %cst_9 = arith.constant dense<0xFF800000> : vector<8xf32>
    %20 = vector.multi_reduction <maximumf>, %19, %cst_9 [1] : vector<8x8xf32> to vector<8xf32>
    %21 = vector.shape_cast %20 : vector<8xf32> to vector<8x1xf32>
    %22 = vector.broadcast %21 : vector<8x1xf32> to vector<8x8xf32>
    %23 = arith.subf %19, %22 : vector<8x8xf32>
    %24 = math.exp %23 : vector<8x8xf32>
    %cst_10 = arith.constant dense<0.000000e+00> : vector<8xf32>
    %25 = vector.multi_reduction <add>, %24, %cst_10 [1] : vector<8x8xf32> to vector<8xf32>
    %26 = vector.shape_cast %25 : vector<8xf32> to vector<8x1xf32>
    %27 = tpu.reciprocal %26 {approx = true} : vector<8x1xf32> -> vector<8x1xf32>
    %28 = vector.broadcast %27 : vector<8x1xf32> to vector<8x8xf32>
    %29 = arith.mulf %24, %28 : vector<8x8xf32>
    %30 = arith.truncf %29 : vector<8x8xf32> to vector<8x8xbf16>
    %cst_11 = arith.constant dense<0.000000e+00> : vector<8x32xf32>
    %31 = tpu.matmul %30, %17, %cst_11 {dimension_numbers = #tpu.dot_dimension_numbers<[1], [0], [0], [1], [0, 0, 1, 1], [], []>} : vector<8x8xbf16>, vector<8x32xbf16>, vector<8x32xf32> -> vector<8x32xf32>
    %c0_12 = arith.constant 0 : index
    %c0_13 = arith.constant 0 : index
    %32 = vector.load %arg10[%c0_12, %c0_13] : memref<8x128xf32, #tpu.memory_space<vmem>>, vector<8x32xf32>
    tpu.vector_store %arg10[%c0_12, %c0_13], %31 {strides = array<i32>} : memref<8x128xf32, #tpu.memory_space<vmem>>, vector<8x32xf32>,
    %33 = vector.extract_strided_slice %9 {offsets = [0, 32], sizes = [8, 32], strides = [1, 1]} : vector<8x128xf32> to vector<8x32xf32>
    %34 = arith.truncf %33 : vector<8x32xf32> to vector<8x32xbf16>
    %35 = vector.extract_strided_slice %10 {offsets = [0, 32], sizes = [8, 32], strides = [1, 1]} : vector<8x128xf32> to vector<8x32xf32>
    %36 = arith.truncf %35 : vector<8x32xf32> to vector<8x32xbf16>
    %37 = vector.extract_strided_slice %11 {offsets = [0, 32], sizes = [8, 32], strides = [1, 1]} : vector<8x128xf32> to vector<8x32xf32>
    %38 = arith.truncf %37 : vector<8x32xf32> to vector<8x32xbf16>
    %cst_14 = arith.constant dense<0.000000e+00> : vector<8x8xf32>
    %39 = tpu.matmul %34, %36, %cst_14 {dimension_numbers = #tpu.dot_dimension_numbers<[1], [1], [0], [0], [0, 0, 1, 0], [], []>} : vector<8x32xbf16>, vector<8x32xbf16>, vector<8x8xf32> -> vector<8x8xf32>
    %40 = arith.addf %39, %0 : vector<8x8xf32>
    %cst_15 = arith.constant dense<0xFF800000> : vector<8xf32>
    %41 = vector.multi_reduction <maximumf>, %40, %cst_15 [1] : vector<8x8xf32> to vector<8xf32>
    %42 = vector.shape_cast %41 : vector<8xf32> to vector<8x1xf32>
    %43 = vector.broadcast %42 : vector<8x1xf32> to vector<8x8xf32>
    %44 = arith.subf %40, %43 : vector<8x8xf32>
    %45 = math.exp %44 : vector<8x8xf32>
    %cst_16 = arith.constant dense<0.000000e+00> : vector<8xf32>
    %46 = vector.multi_reduction <add>, %45, %cst_16 [1] : vector<8x8xf32> to vector<8xf32>
    %47 = vector.shape_cast %46 : vector<8xf32> to vector<8x1xf32>
    %48 = tpu.reciprocal %47 {approx = true} : vector<8x1xf32> -> vector<8x1xf32>
    %49 = vector.broadcast %48 : vector<8x1xf32> to vector<8x8xf32>
    %50 = arith.mulf %45, %49 : vector<8x8xf32>
    %51 = arith.truncf %50 : vector<8x8xf32> to vector<8x8xbf16>
    %cst_17 = arith.constant dense<0.000000e+00> : vector<8x32xf32>
    %52 = tpu.matmul %51, %38, %cst_17 {dimension_numbers = #tpu.dot_dimension_numbers<[1], [0], [0], [1], [0, 0, 1, 1], [], []>} : vector<8x8xbf16>, vector<8x32xbf16>, vector<8x32xf32> -> vector<8x32xf32>
    %c0_18 = arith.constant 0 : index
    %c32 = arith.constant 32 : index
    %53 = vector.load %arg10[%c0_18, %c32] : memref<8x128xf32, #tpu.memory_space<vmem>>, vector<8x32xf32>
    tpu.vector_store %arg10[%c0_18, %c32], %52 {strides = array<i32>} : memref<8x128xf32, #tpu.memory_space<vmem>>, vector<8x32xf32>,
    %54 = vector.extract_strided_slice %9 {offsets = [0, 64], sizes = [8, 32], strides = [1, 1]} : vector<8x128xf32> to vector<8x32xf32>
    %55 = arith.truncf %54 : vector<8x32xf32> to vector<8x32xbf16>
    %56 = vector.extract_strided_slice %10 {offsets = [0, 64], sizes = [8, 32], strides = [1, 1]} : vector<8x128xf32> to vector<8x32xf32>
    %57 = arith.truncf %56 : vector<8x32xf32> to vector<8x32xbf16>
    %58 = vector.extract_strided_slice %11 {offsets = [0, 64], sizes = [8, 32], strides = [1, 1]} : vector<8x128xf32> to vector<8x32xf32>
    %59 = arith.truncf %58 : vector<8x32xf32> to vector<8x32xbf16>
    %cst_19 = arith.constant dense<0.000000e+00> : vector<8x8xf32>
    %60 = tpu.matmul %55, %57, %cst_19 {dimension_numbers = #tpu.dot_dimension_numbers<[1], [1], [0], [0], [0, 0, 1, 0], [], []>} : vector<8x32xbf16>, vector<8x32xbf16>, vector<8x8xf32> -> vector<8x8xf32>
    %61 = arith.addf %60, %0 : vector<8x8xf32>
    %cst_20 = arith.constant dense<0xFF800000> : vector<8xf32>
    %62 = vector.multi_reduction <maximumf>, %61, %cst_20 [1] : vector<8x8xf32> to vector<8xf32>
    %63 = vector.shape_cast %62 : vector<8xf32> to vector<8x1xf32>
    %64 = vector.broadcast %63 : vector<8x1xf32> to vector<8x8xf32>
    %65 = arith.subf %61, %64 : vector<8x8xf32>
    %66 = math.exp %65 : vector<8x8xf32>
    %cst_21 = arith.constant dense<0.000000e+00> : vector<8xf32>
    %67 = vector.multi_reduction <add>, %66, %cst_21 [1] : vector<8x8xf32> to vector<8xf32>
    %68 = vector.shape_cast %67 : vector<8xf32> to vector<8x1xf32>
    %69 = tpu.reciprocal %68 {approx = true} : vector<8x1xf32> -> vector<8x1xf32>
    %70 = vector.broadcast %69 : vector<8x1xf32> to vector<8x8xf32>
    %71 = arith.mulf %66, %70 : vector<8x8xf32>
    %72 = arith.truncf %71 : vector<8x8xf32> to vector<8x8xbf16>
    %cst_22 = arith.constant dense<0.000000e+00> : vector<8x32xf32>
    %73 = tpu.matmul %72, %59, %cst_22 {dimension_numbers = #tpu.dot_dimension_numbers<[1], [0], [0], [1], [0, 0, 1, 1], [], []>} : vector<8x8xbf16>, vector<8x32xbf16>, vector<8x32xf32> -> vector<8x32xf32>
    %c0_23 = arith.constant 0 : index
    %c64 = arith.constant 64 : index
    %74 = vector.load %arg10[%c0_23, %c64] : memref<8x128xf32, #tpu.memory_space<vmem>>, vector<8x32xf32>
    tpu.vector_store %arg10[%c0_23, %c64], %73 {strides = array<i32>} : memref<8x128xf32, #tpu.memory_space<vmem>>, vector<8x32xf32>,
    %75 = vector.extract_strided_slice %9 {offsets = [0, 96], sizes = [8, 32], strides = [1, 1]} : vector<8x128xf32> to vector<8x32xf32>
    %76 = arith.truncf %75 : vector<8x32xf32> to vector<8x32xbf16>
    %77 = vector.extract_strided_slice %10 {offsets = [0, 96], sizes = [8, 32], strides = [1, 1]} : vector<8x128xf32> to vector<8x32xf32>
    %78 = arith.truncf %77 : vector<8x32xf32> to vector<8x32xbf16>
    %79 = vector.extract_strided_slice %11 {offsets = [0, 96], sizes = [8, 32], strides = [1, 1]} : vector<8x128xf32> to vector<8x32xf32>
    %80 = arith.truncf %79 : vector<8x32xf32> to vector<8x32xbf16>
    %cst_24 = arith.constant dense<0.000000e+00> : vector<8x8xf32>
    %81 = tpu.matmul %76, %78, %cst_24 {dimension_numbers = #tpu.dot_dimension_numbers<[1], [1], [0], [0], [0, 0, 1, 0], [], []>} : vector<8x32xbf16>, vector<8x32xbf16>, vector<8x8xf32> -> vector<8x8xf32>
    %82 = arith.addf %81, %0 : vector<8x8xf32>
    %cst_25 = arith.constant dense<0xFF800000> : vector<8xf32>
    %83 = vector.multi_reduction <maximumf>, %82, %cst_25 [1] : vector<8x8xf32> to vector<8xf32>
    %84 = vector.shape_cast %83 : vector<8xf32> to vector<8x1xf32>
    %85 = vector.broadcast %84 : vector<8x1xf32> to vector<8x8xf32>
    %86 = arith.subf %82, %85 : vector<8x8xf32>
    %87 = math.exp %86 : vector<8x8xf32>
    %cst_26 = arith.constant dense<0.000000e+00> : vector<8xf32>
    %88 = vector.multi_reduction <add>, %87, %cst_26 [1] : vector<8x8xf32> to vector<8xf32>
    %89 = vector.shape_cast %88 : vector<8xf32> to vector<8x1xf32>
    %90 = tpu.reciprocal %89 {approx = true} : vector<8x1xf32> -> vector<8x1xf32>
    %91 = vector.broadcast %90 : vector<8x1xf32> to vector<8x8xf32>
    %92 = arith.mulf %87, %91 : vector<8x8xf32>
    %93 = arith.truncf %92 : vector<8x8xf32> to vector<8x8xbf16>
    %cst_27 = arith.constant dense<0.000000e+00> : vector<8x32xf32>
    %94 = tpu.matmul %93, %80, %cst_27 {dimension_numbers = #tpu.dot_dimension_numbers<[1], [0], [0], [1], [0, 0, 1, 1], [], []>} : vector<8x8xbf16>, vector<8x32xbf16>, vector<8x32xf32> -> vector<8x32xf32>
    %c0_28 = arith.constant 0 : index
    %c96 = arith.constant 96 : index
    %95 = vector.load %arg10[%c0_28, %c96] : memref<8x128xf32, #tpu.memory_space<vmem>>, vector<8x32xf32>
    tpu.vector_store %arg10[%c0_28, %c96], %94 {strides = array<i32>} : memref<8x128xf32, #tpu.memory_space<vmem>>, vector<8x32xf32>,
    %c0_29 = arith.constant 0 : index
    %c0_30 = arith.constant 0 : index
    %96 = vector.load %arg10[%c0_29, %c0_30] : memref<8x128xf32, #tpu.memory_space<vmem>>, vector<8x128xf32>
    %97 = arith.truncf %96 : vector<8x128xf32> to vector<8x128xbf16>
    %c0_31 = arith.constant 0 : index
    %c0_32 = arith.constant 0 : index
    %98 = vector.load %arg4[%c0_31, %c0_32] : memref<128x128xbf16, #tpu.memory_space<vmem>>, vector<128x128xbf16>
    %cst_33 = arith.constant dense<0.000000e+00> : vector<8x128xf32>
    %99 = tpu.matmul %97, %98, %cst_33 {dimension_numbers = #tpu.dot_dimension_numbers<[1], [0], [0], [1], [0, 0, 1, 1], [], []>} : vector<8x128xbf16>, vector<128x128xbf16>, vector<8x128xf32> -> vector<8x128xf32>
    %c0_34 = arith.constant 0 : index
    %c0_35 = arith.constant 0 : index
    %100 = vector.load %arg5[%c0_34, %c0_35] : memref<1x128xf32, #tpu.memory_space<vmem>>, vector<1x128xf32>
    %101 = vector.broadcast %100 : vector<1x128xf32> to vector<8x128xf32>
    %102 = arith.addf %99, %101 : vector<8x128xf32>
    %103 = arith.addf %2, %102 : vector<8x128xf32>
    %cst_36 = arith.constant dense<0.000000e+00> : vector<8xf32>
    %104 = vector.multi_reduction <add>, %103, %cst_36 [1] : vector<8x128xf32> to vector<8xf32>
    %105 = vector.shape_cast %104 : vector<8xf32> to vector<8x1xf32>
    %cst_37 = arith.constant 1.280000e+02 : f32
    %106 = vector.broadcast %cst_37 : f32 to vector<8x1xf32>
    %107 = arith.divf %105, %106 : vector<8x1xf32>
    %108 = vector.broadcast %107 : vector<8x1xf32> to vector<8x128xf32>
    %109 = arith.subf %103, %108 : vector<8x128xf32>
    %110 = arith.mulf %109, %109 : vector<8x128xf32>
    %cst_38 = arith.constant dense<0.000000e+00> : vector<8xf32>
    %111 = vector.multi_reduction <add>, %110, %cst_38 [1] : vector<8x128xf32> to vector<8xf32>
    %112 = vector.shape_cast %111 : vector<8xf32> to vector<8x1xf32>
    %cst_39 = arith.constant 1.280000e+02 : f32
    %113 = vector.broadcast %cst_39 : f32 to vector<8x1xf32>
    %114 = arith.divf %112, %113 : vector<8x1xf32>
    %115 = vector.broadcast %107 : vector<8x1xf32> to vector<8x128xf32>
    %116 = arith.subf %103, %115 : vector<8x128xf32>
    %cst_40 = arith.constant 9.99999974E-6 : f32
    %117 = vector.broadcast %cst_40 : f32 to vector<8x1xf32>
    %118 = arith.addf %114, %117 : vector<8x1xf32>
    %119 = math.rsqrt %118 : vector<8x1xf32>
    %120 = vector.broadcast %119 : vector<8x1xf32> to vector<8x128xf32>
    %121 = arith.mulf %116, %120 : vector<8x128xf32>
    %c0_41 = arith.constant 0 : index
    %c0_42 = arith.constant 0 : index
    %122 = vector.load %arg6[%c0_41, %c0_42] : memref<1x128xf32, #tpu.memory_space<vmem>>, vector<1x128xf32>
    %123 = vector.broadcast %122 : vector<1x128xf32> to vector<8x128xf32>
    %124 = arith.mulf %121, %123 : vector<8x128xf32>
    %c0_43 = arith.constant 0 : index
    %c0_44 = arith.constant 0 : index
    %125 = vector.load %arg7[%c0_43, %c0_44] : memref<1x128xf32, #tpu.memory_space<vmem>>, vector<1x128xf32>
    %126 = vector.broadcast %125 : vector<1x128xf32> to vector<8x128xf32>
    %127 = arith.addf %124, %126 : vector<8x128xf32>
    %c0_45 = arith.constant 0 : index
    %c0_46 = arith.constant 0 : index
    %c0_47 = arith.constant 0 : index
    %128 = vector.load %arg9[%c0_45, %c0_46, %c0_47] : memref<1x8x128xf32, #tpu.memory_space<vmem>>, vector<1x8x128xf32>
    %129 = vector.shape_cast %128 : vector<1x8x128xf32> to vector<8x128xf32>
    %130 = vector.shape_cast %127 : vector<8x128xf32> to vector<1x8x128xf32>
    tpu.vector_store %arg9[%c0_45, %c0_46, %c0_47], %130 {strides = array<i32>} : memref<1x8x128xf32, #tpu.memory_space<vmem>>, vector<1x8x128xf32>,
    return
  }
  func.func @transform_0(%arg0: i32) -> (i32, i32, i32) {
    %c0_i32 = arith.constant 0 : i32
    %c0_i32_0 = arith.constant 0 : i32
    %c0_i32_1 = arith.constant 0 : i32
    return %arg0, %c0_i32, %c0_i32_0 : i32, i32, i32
  }
  func.func @transform_1(%arg0: i32) -> (i32, i32) {
    %c0_i32 = arith.constant 0 : i32
    %c0_i32_0 = arith.constant 0 : i32
    %c0_i32_1 = arith.constant 0 : i32
    return %c0_i32, %c0_i32_0 : i32, i32
  }
  func.func @transform_2(%arg0: i32) -> (i32, i32) {
    %c0_i32 = arith.constant 0 : i32
    %c0_i32_0 = arith.constant 0 : i32
    %c0_i32_1 = arith.constant 0 : i32
    return %c0_i32, %c0_i32_0 : i32, i32
  }
  func.func @transform_3(%arg0: i32) -> (i32, i32) {
    %c0_i32 = arith.constant 0 : i32
    %c0_i32_0 = arith.constant 0 : i32
    %c0_i32_1 = arith.constant 0 : i32
    return %c0_i32, %c0_i32_0 : i32, i32
  }
  func.func @transform_4(%arg0: i32) -> (i32, i32) {
    %c0_i32 = arith.constant 0 : i32
    %c0_i32_0 = arith.constant 0 : i32
    %c0_i32_1 = arith.constant 0 : i32
    return %c0_i32, %c0_i32_0 : i32, i32
  }
  func.func @transform_5(%arg0: i32) -> (i32, i32) {
    %c0_i32 = arith.constant 0 : i32
    %c0_i32_0 = arith.constant 0 : i32
    %c0_i32_1 = arith.constant 0 : i32
    return %c0_i32, %c0_i32_0 : i32, i32
  }
  func.func @transform_6(%arg0: i32) -> (i32, i32) {
    %c0_i32 = arith.constant 0 : i32
    %c0_i32_0 = arith.constant 0 : i32
    %c0_i32_1 = arith.constant 0 : i32
    return %c0_i32, %c0_i32_0 : i32, i32
  }
  func.func @transform_7(%arg0: i32) -> (i32, i32) {
    %c0_i32 = arith.constant 0 : i32
    %c0_i32_0 = arith.constant 0 : i32
    %c0_i32_1 = arith.constant 0 : i32
    return %c0_i32, %c0_i32_0 : i32, i32
  }
  func.func @transform_8(%arg0: i32) -> (i32, i32, i32) {
    %c0_i32 = arith.constant 0 : i32
    %c0_i32_0 = arith.constant 0 : i32
    %c0_i32_1 = arith.constant 0 : i32
    return %arg0, %c0_i32, %c0_i32_0 : i32, i32, i32
  }
}

</mosaic_0001>

<bundles_post_ra>
// kernel: tpu_custom_call.1
= control target key start
LH: loop header
LB: loop body
LE: loop exit
PB: predicated region body
PF: predicated region fallthrough
CT: control target
= control target key end

     0   :  { %s1908_s0 = inlined_call_operand.hbm [shape: f32[2,8,128], index: 0, kind: input, shape index: {}]   ;;  %s1909_s1 = inlined_call_operand.hbm [shape: bf16[128,384], index: 1, kind: input, shape index: {}]   ;;  %s1910_s2 = inlined_call_operand.hbm [shape: f32[1,384], index: 2, kind: input, shape index: {}]   ;;  %s1911_s3 = inlined_call_operand.hbm [shape: bf16[128,128], index: 3, kind: input, shape index: {}]   ;;  %s1912_s4 = inlined_call_operand.vmem [shape: f32[1,128], index: 4, kind: input, shape index: {}]   ;;  %s1913_s5 = inlined_call_operand.vmem [shape: f32[1,128], index: 5, kind: input, shape index: {}]   ;;  %s1914_s6 = inlined_call_operand.vmem [shape: f32[1,128], index: 6, kind: input, shape index: {}]   ;;  %s1915_s7 = inlined_call_operand.hbm [shape: f32[8,8], index: 7, kind: input, shape index: {}]   ;;  %s1916_s8 = inlined_call_operand.hbm [shape: f32[2,8,128], index: 8, kind: output, shape index: {}]  }
   0x1   :  { %1917 = sst [smem:[#allocation17_spill]] %s1909_s1 }
   0x2   :  { %1918 = sst [smem:[#allocation18_spill]] %s1910_s2 }
   0x3   :  { %1919 = sst [smem:[#allocation19_spill]] %s1911_s3 }
   0x4   :  { %13 = vsyncpa [#allocation4], 0 }
   0x5   :  { %15 = vsyncpa [#allocation4 + $0x1], 0 }
   0x6   :  { %16 = vsyncpa [#allocation7], 0 }
   0x7   :  { %17 = vsyncpa [#allocation10], 0 }
   0x8   :  { %18 = vsyncpa [#allocation5], 0 }
   0x9   :  { %20 = vsyncpa [#allocation5 + $0x1], 0  ;;  %s1677_s27 = smov 0   ;;  %s1679_s28 = smov 0  }
   0xa   :  { %s1681_s29 = smov 0   ;;  %s1683_s30 = smov 0  }
   0xb LB: > { %s1920_s1 = sld [smem:[#allocation17_spill]]  ;;  %s1701_s12 = sadd.s32 4294967295, %s1618_s30   ;;  %s1618_s30 = sphi %s1683_s30, %s1934_s30   ;;  %s1614_s29 = sphi %s1681_s29, %s1933_s29   ;;  %s1610_s28 = sphi %s1679_s28, %s1932_s28   ;;  %s1606_s27 = sphi %s1677_s27, %s1931_s27  }
   0xc   : > { %p1089_p0 = scmp.ge.s32.totalorder %s1618_s30, 1  ;;  %p47_p1 = scmp.eq.s32.totalorder %s1701_s12, 0 }
   0xd   : > { %p230_p2 = scmp.lt.s32.totalorder %s1618_s30, 3  ;;  %s1620_s14 = smov [#allocation6]  }
   0xe   : > { %s243_s15 = sshll.u32 %s1620_s14, 4  ;;  %s1922_s3 = sld [smem:[#allocation19_spill]]  ;;  %s244_s15 = int_to_ptr.vmem [resolvable:$true] %s243_s15 }
   0xf   : > { %p1706_p3 = pnand %p1089_p0, %p230_p2  ;;  %s1621_s20 = smov [#allocation9]  }
  0x10   : > { %s269_s21 = sshll.u32 %s1621_s20, 4  ;;  %s1622_s22 = smov 192   ;;  %s270_s21 = int_to_ptr.vmem [resolvable:$true] %s269_s21 }
  0x11   : > { %s241_s11 = sshll.u32 %s1920_s1, 4  ;;  %p1296_p4 = pneg %p1706_p3  ;;  %s242_s11 = int_to_ptr.hbm [resolvable:$true] %s241_s11 }
  0x12   : > { %s1623_s23 = smov 12   ;;  %s1624_s24 = smov 64  }
  0x13   : > { %p1718_p6 = pnand %p1296_p4, %p47_p1  ;;  %s1625_s25 = smov 4  }
  0x14   : > { %s267_s18 = sshll.u32 %s1922_s3, 4  ;;  %s1924_s2 = sld [smem:[#allocation18_spill]]  ;;  %s268_s18 = int_to_ptr.hbm [resolvable:$true] %s267_s18 }
  0x15   : > { %1299 = dma.hbm_to_vmem [thread:$0]  (!%p1718_p6), %s242_s11, 3072, %s244_s15, [#allocation7], %s1622_s22, %s1622_s22, %s1623_s23  }
  0x16   : > { %1305 = dma.hbm_to_vmem [thread:$0]  (!%p1718_p6), %s268_s18, 1024, %s270_s21, [#allocation10], %s1624_s24, %s1624_s24, %s1625_s25  }
  0x17   : > { %s1626_s14 = smov [#allocation8]   ;;  %s291_s17 = sshll.u32 %s1915_s7, 4  ;;  %s292_s17 = int_to_ptr.hbm [resolvable:$true] %s291_s17 }
  0x18   : > { %s258_s11 = sshll.u32 %s1626_s14, 4  ;;  %s1627_s18 = smov [#allocation11]   ;;  %s259_s11 = int_to_ptr.vmem [resolvable:$true] %s258_s11 }
  0x19   : > { %s293_s20 = sshll.u32 %s1627_s18, 4  ;;  %s1088_s21 = sadd.s32 4294967294, %s1618_s30   ;;  %s294_s20 = int_to_ptr.vmem [resolvable:$true] %s293_s20 }
  0x1a   : > { %s256_s10 = sshll.u32 %s1924_s2, 4  ;;  %s1738_s22 = sadd.s32 1, %s1618_s30   ;;  %s257_s10 = int_to_ptr.hbm [resolvable:$true] %s256_s10 }
  0x1b   : > { %1302 = dma.hbm_to_vmem [thread:$0]  (!%p1718_p6), %s257_s10, 48, %s259_s11, [#allocation7]  }
  0x1c   : > { %1308 = dma.hbm_to_vmem [thread:$0]  (!%p1718_p6), %s292_s17, 128, %s294_s20, [#allocation10]  }
  0x1d   : > { %s30_s23 = ssub.s32 %s1618_s30, %s1738_s22  ;;  %s33_s24 = sadd.s32 1, %s1614_s29 }
  0x1e   : > { %p31_p7 = scmp.eq.s32.totalorder %s30_s23, 0  ;;  %p40_p8 = scmp.ne.s32.totalorder %s1614_s29, %s1610_s28 }
  0x1f   : > { %p41_p9 = scmp.eq.s32.totalorder %s1618_s30, 0  ;;  %p46_p10 = scmp.ne.s32.totalorder %s1610_s28, %s1606_s27 }
  0x20   : > { %s1749_s25 = scalar_select %p31_p7, %s1614_s29, %s33_s24  }
  0x21   : > { %p1751_p11 = por %p41_p9, %p40_p8  ;;  %p1757_p12 = por %p47_p1, %p46_p10 }
  0x22   : > { %p217_p13 = scmp.eq.s32.totalorder %s1701_s12, 1  ;;  %p223_p0 = scmp.eq.s32.totalorder %s1088_s21, 1 }
  0x23   : > { %p1321_p2 = scmp.lt.s32.totalorder %s1618_s30, 2  ;;  %s304_s9 = sand.u32 1, %s1614_s29  }
  0x24   : > { %p1764_p4 = por %p217_p13, %p40_p8  ;;  %p1768_p6 = por %p223_p0, %p46_p10 }
  0x25   : > { %s1095_s11 = sshll.u32 %s304_s9, 3  ;;  %s1096_s15 = sshll.u32 %s1618_s30, 3 }
  0x26   : > { %s312_s18 = scalar_lea.hbm %s1908_s0, %s1096_s15  ;;  %s308_s20 = scalar_lea.vmem [#allocation3], %s1095_s11 }
  0x27   : > { %s316_s23 = sshll.u32 %s308_s20, 4  ;;  %s314_s24 = sshll.u32 %s312_s18, 4  ;;  %s317_s23 = int_to_ptr.vmem [resolvable:$true] %s316_s23  ;;  %s315_s24 = int_to_ptr.hbm [resolvable:$true] %s314_s24 }
  0x28   : > { %p1778_p7 = pnand %p1321_p2, %p1751_p11  ;;  %s305_s1 = scalar_lea.sflag [#allocation4], %s304_s9 }
  0x29   : > { %s1514_s2 = sshra.s32 %s315_s24, 4  ;;  %s1521_s16 = scalar_lea.hbm %s1908_s0, 16  ;;  %s1515_s2 = int_to_ptr.hbm [resolvable:$true] %s1514_s2 }
  0x2a   : > { %s1516_s3 = scalar_lea.hbm %s1515_s2, 8  ;;  %p1518_p9 = pneg %p1778_p7 }
  0x2b   : > { %p1517_p8 = scmp.ne.s32.totalorder %s1515_s2, %s1516_s3  ;;  %p1522_p11 = scmp.lt.s32.totalorder %s1515_s2, %s1908_s0 }
  0x2c   : > { %p1523_p0 = scmp.lt.s32.totalorder %s1521_s16, %s1516_s3 }
  0x2d   : > { %p1519_p10 = pnand %p1518_p9, %p1517_p8 }
  0x2e   : > { %p1524_p2 = por %p1523_p0, %p1522_p11 }
  0x2f   : > { %p1520_p13 = pneg %p1519_p10 }
  0x31   : > { %p1525_p5 = pnand %p1524_p2, %p1520_p13 }
  0x33   : > { %1528 = shalt.err (!%p1525_p5)
}
  0x34   : > { %1312 = dma.hbm_to_vmem [thread:$0]  (!%p1778_p7), %s315_s24, 128, %s317_s23, %s305_s1  }
  0x35   : > { %325 = sbr.rel (%p1706_p3) target bundleno = 1716 (0x6b4), region = 52  ;;  %s1795_s9 = sand.u32 (!%p1706_p3), 1, %s1610_s28  }
  0x36   : > { %s1098_s18 = sshll.u32 (!%p1706_p3), %s1795_s9, 3  ;;  %s328_s20 = scalar_lea.sflag (!%p1706_p3), [#allocation4], %s1795_s9 }
  0x37   : > { %s1801_s2 = scalar_lea.vmem (!%p1706_p3), [#allocation3], %s1098_s18 }
  0x3a   : > { %1589 = dma.done.wait (%p1757_p12), %s328_s20, 128  }
  0x3b   : > { %1591 = vsyncadd (%p1757_p12), %s328_s20, 4294967168 }
  0x3c   : > { %1593 = dma.done.wait (%p47_p1), [#allocation7], 3120  }
  0x3d   : > { %1595 = vsyncadd (%p47_p1), [#allocation7], 4294964176 }
  0x3e   : > { %1597 = dma.done.wait (%p47_p1), [#allocation10], 1152  }
  0x3f   : > { %1599 = vsyncadd (%p47_p1), [#allocation10], 4294966144  ;;  %v1190_v0 = vld [vmem:[#allocation6 + $0xa8] sm:$0xf]  ;;  %v1266_v1 = vld [vmem:[#allocation6 + $0xb0] sm:$0xf0] }
  0x40   : > { %v1265_v2 = vld [vmem:[#allocation6 + $0xac] sm:$0xf]  ;;  %v1191_v3 = vor.u32 %v1266_v1, %v1190_v0  ;;  %v1192_v4 = vld [vmem:[#allocation6 + $0xb4] sm:$0xf0]  ;;  %v1178_v5 = vld [vmem:[#allocation6 + $0x90] sm:$0xf] }
  0x41   : > { %v1263_v6 = vld [vmem:[#allocation6 + $0x98] sm:$0xf0]  ;;  %v1195_v7 = vor.u32 %v1265_v2, %v1192_v4  ;;  %v1262_v8 = vld [vmem:[#allocation6 + $0x94] sm:$0xf]  ;;  %v1180_v9 = vld [vmem:[#allocation6 + $0x9c] sm:$0xf0] }
  0x42   : > { %557 = vmatpush.bf16.msra.mxu0 %v1191_v3  ;;  %v1179_v10 = vor.u32 %v1263_v6, %v1178_v5  ;;  %v1183_v11 = vor.u32 %v1262_v8, %v1180_v9  ;;  %v1166_v12 = vld [vmem:[#allocation6 + $0x78] sm:$0xf]  ;;  %v1260_v13 = vld [vmem:[#allocation6 + $0x80] sm:$0xf0]  ;;  %v1259_v14 = vld [vmem:[#allocation6 + $0x7c] sm:$0xf] }
  0x43   : > { %570 = vmatpush.bf16.msra.mxu1 %v1195_v7  ;;  %v1168_v15 = vld [vmem:[#allocation6 + $0x84] sm:$0xf0]  ;;  %v1167_v16 = vor.u32 %v1260_v13, %v1166_v12  ;;  %v1154_v18 = vld [vmem:[#allocation6 + $0x60] sm:$0xf]  ;;  %v1257_v19 = vld [vmem:[#allocation6 + $0x68] sm:$0xf0] }
  0x44   : > { %v1171_v17 = vor.u32 %v1259_v14, %v1168_v15  ;;  %v1256_v20 = vld [vmem:[#allocation6 + $0x64] sm:$0xf]  ;;  %v1156_v21 = vld [vmem:[#allocation6 + $0x6c] sm:$0xf0]  ;;  %v1155_v22 = vor.u32 %v1257_v19, %v1154_v18  ;;  %v1267_v24 = vld [vmem:[#allocation6 + $0xb8] sm:$0xf0] }
  0x45   : > { %v1198_v23 = vld [vmem:[#allocation6 + $0xb0] sm:$0xf]  ;;  %v1186_v25 = vld [vmem:[#allocation6 + $0x98] sm:$0xf]  ;;  %v1159_v26 = vor.u32 %v1256_v20, %v1156_v21  ;;  %v1142_v27 = vld [vmem:[#allocation6 + $0x48] sm:$0xf] }
  0x46   : > { %558 = vmatpush.bf16.msra.mxu0 %v1179_v10  ;;  %v1254_v28 = vld [vmem:[#allocation6 + $0x50] sm:$0xf0]  ;;  %v1199_v29 = vor.u32 %v1267_v24, %v1198_v23  ;;  %v1264_v30 = vld [vmem:[#allocation6 + $0xa0] sm:$0xf0]  ;;  %v1253_v31 = vld [vmem:[#allocation6 + $0x4c] sm:$0xf] }
  0x47   : > { %571 = vmatpush.bf16.msra.mxu1 %v1183_v11  ;;  %v1144_v32 = vld [vmem:[#allocation6 + $0x54] sm:$0xf0]  ;;  %v1187_v33 = vor.u32 %v1264_v30, %v1186_v25  ;;  %v1143_v34 = vor.u32 %v1254_v28, %v1142_v27  ;;  %v1130_v35 = vld [vmem:[#allocation6 + $0x30] sm:$0xf]  ;;  %v1174_v36 = vld [vmem:[#allocation6 + $0x80] sm:$0xf] }
  0x48   : > { %583 = vmatpush.bf16.msra.mxu2 %v1199_v29  ;;  %v1261_v37 = vld [vmem:[#allocation6 + $0x88] sm:$0xf0]  ;;  %v1147_v38 = vor.u32 %v1253_v31, %v1144_v32  ;;  %v1251_v39 = vld [vmem:[#allocation6 + $0x38] sm:$0xf0]  ;;  %v1250_v40 = vld [vmem:[#allocation6 + $0x34] sm:$0xf] }
  0x49   : > { %v1132_v41 = vld [vmem:[#allocation6 + $0x3c] sm:$0xf0]  ;;  %v1175_v42 = vor.u32 %v1261_v37, %v1174_v36  ;;  %v1131_v43 = vor.u32 %v1251_v39, %v1130_v35  ;;  %v1162_v44 = vld [vmem:[#allocation6 + $0x68] sm:$0xf]  ;;  %v1258_v45 = vld [vmem:[#allocation6 + $0x70] sm:$0xf0] }
  0x4a   : > { %559 = vmatpush.bf16.msra.mxu0 %v1167_v16  ;;  %v1135_v46 = vor.u32 %v1250_v40, %v1132_v41  ;;  %v1118_v47 = vld [vmem:[#allocation6 + $0x18] sm:$0xf]  ;;  %v1248_v48 = vld [vmem:[#allocation6 + $0x20] sm:$0xf0]  ;;  %v1247_v49 = vld [vmem:[#allocation6 + $0x1c] sm:$0xf]  ;;  %v1163_v51 = vor.u32 %v1258_v45, %v1162_v44 }
  0x4b   : > { %572 = vmatpush.bf16.msra.mxu1 %v1171_v17  ;;  %v1120_v50 = vld [vmem:[#allocation6 + $0x24] sm:$0xf0]  ;;  %v1119_v52 = vor.u32 %v1248_v48, %v1118_v47  ;;  %v1150_v53 = vld [vmem:[#allocation6 + $0x50] sm:$0xf]  ;;  %v1255_v54 = vld [vmem:[#allocation6 + $0x58] sm:$0xf0] }
  0x4c   : > { %584 = vmatpush.bf16.msra.mxu2 %v1187_v33  ;;  %v1123_v55 = vor.u32 %v1247_v49, %v1120_v50  ;;  %v1106_v56 = vld [vmem:[#allocation6] sm:$0xf]  ;;  %v1245_v57 = vld [vmem:[#allocation6 + $0x8] sm:$0xf0]  ;;  %v1244_v58 = vld [vmem:[#allocation6 + $0x4] sm:$0xf]  ;;  %v1151_v60 = vor.u32 %v1255_v54, %v1150_v53 }
  0x4d   : > { %v1108_v59 = vld [vmem:[#allocation6 + $0xc] sm:$0xf0]  ;;  %v1107_v61 = vor.u32 %v1245_v57, %v1106_v56  ;;  %v1138_v63 = vld [vmem:[#allocation6 + $0x38] sm:$0xf]  ;;  %v1252_v0 = vld [vmem:[#allocation6 + $0x40] sm:$0xf0] }
  0x4e   : > { %560 = vmatpush.bf16.msra.mxu0 %v1155_v22  ;;  %v1816_v62 = vld [vmem:[%s1801_s2] sm:$0xff]  ;;  %v1111_v1 = vor.u32 %v1244_v58, %v1108_v59  ;;  %v1139_v3 = vor.u32 %v1252_v0, %v1138_v63  ;;  %v1126_v4 = vld [vmem:[#allocation6 + $0x20] sm:$0xf]  ;;  %v1249_v5 = vld [vmem:[#allocation6 + $0x28] sm:$0xf0]  ;;  %vm599_vm0 = vcmask 261120  }
  0x4f   : > { %573 = vmatpush.bf16.msra.mxu1 %v1159_v26  ;;  %v388_v2 = vpack.c.bf16 %v1816_v62, %v1816_v62  ;;  %v1127_v6 = vor.u32 %v1249_v5, %v1126_v4  ;;  %v1114_v7 = vld [vmem:[#allocation6 + $0x8] sm:$0xf]  ;;  %v1246_v8 = vld [vmem:[#allocation6 + $0x10] sm:$0xf0]  ;;  %v421_v10 = vld [vmem:[#allocation8] sm:$0x7] }
  0x50   : > { %585 = vmatpush.bf16.msra.mxu2 %v1175_v42  ;;  %v1115_v9 = vor.u32 %v1246_v8, %v1114_v7  ;;  %v424_v11 = vperm.slane %v421_v10, 1  ;;  %v423_v14 = vperm.slane %v421_v10, 0  ;;  %s1628_s1 = smov 64   ;;  %s1629_s3 = smov 96   ;;  %v425_v23 = vperm.slane %v421_v10, 2  ;;  %v386_v32 = vld [vmem:[#allocation11] sm:$0xff] }
  0x51   : > { %s1630_s13 = smov 32   ;;  %vm635_vm1 = vcmask 1043456   ;;  %vm619_vm2 = vcmask 64512   ;;  %vm716_vm3 = vcmask 523520   ;;  %vm778_vm4 = vcmask 785920   ;;  %s1241_s24 = sshll.u32 %s1701_s12, 3 }
  0x52   : > { %561 = vmatpush.bf16.msra.mxu0 %v1143_v34  ;;  %vm840_vm5 = vcmask 1048320   ;;  %s975_s17 = scalar_lea.hbm %s1916_s8, %s1241_s24  ;;  %s384_s12 = scalar_lea.vmem [#allocation12], %s1098_s18 }
  0x53   : > { %574 = vmatpush.bf16.msra.mxu1 %v1147_v38  ;;  %s977_s2 = sshll.u32 %s384_s12, 4  ;;  %s1564_s21 = scalar_lea.hbm %s1916_s8, 16  ;;  %s978_s2 = int_to_ptr.vmem [resolvable:$true] %s977_s2 }
  0x54   : > { %586 = vmatpush.bf16.msra.mxu2 %v1163_v51 }
  0x56   : > { %562 = vmatpush.bf16.msra.mxu0 %v1131_v43 }
  0x57   : > { %575 = vmatpush.bf16.msra.mxu1 %v1135_v46 }
  0x58   : > { %587 = vmatpush.bf16.msra.mxu2 %v1151_v60 }
  0x5a   : > { %563 = vmatpush.bf16.msra.mxu0 %v1119_v52 }
  0x5b   : > { %576 = vmatpush.bf16.msra.mxu1 %v1123_v55 }
  0x5c   : > { %588 = vmatpush.bf16.msra.mxu2 %v1139_v3 }
  0x5e   : > { %564 = vmatpush.bf16.msra.mxu0 %v1107_v61 }
  0x5f   : > { %577 = vmatpush.bf16.msra.mxu1 %v1111_v1 }
  0x60   : > { %589 = vmatpush.bf16.msra.mxu2 %v1127_v6 }
  0x61   : > { %565 = vmatmul.bf16.vlgmr.msra.gmra.mxu0 %v388_v2 }
  0x62   : > { %578 = vmatmul.bf16.vlgmr.msra.gmra.mxu1 %v388_v2 }
  0x64   : > { %590 = vmatpush.bf16.msra.mxu2 %v1115_v9 }
  0x67   : > { %591 = vmatmul.bf16.vlgmr.msra.gmra.mxu2 %v388_v2 }
  0xde   : > { %v566_v12 = vpop.f32.mrf.mxu0 }
  0xdf   : > { %v579_v13 = vpop.f32.mrf.mxu1  ;;  %v567_v17 = vadd.f32 %v566_v12, %v423_v14 }
  0xe0   : > { %v580_v15 = vadd.f32 %v579_v13, %v424_v11 }
  0xe1   : > { %v596_v21 = vpack.c.bf16 %v567_v17, %v567_v17 }
  0xe2   : > { %v597_v16 = vpack.c.bf16 %v580_v15, %v580_v15 }
  0xe4   : > { %720 = vrot.lane.b32.xlu2 %v597_v16, %s1628_s1  ;;  %657 = vrot.lane.b32.xlu1 %v597_v16, %s1629_s3  ;;  %v604_v18 = vsel %vm599_vm0, %v597_v16, 0 }
  0xe5   : > { %613 = vmatpush.bf16.xpose.msra.mxu3 %v604_v18 }
  0xe6   : > { %v568_v19 = vpop.f32.mrf.mxu0 }
  0xe7   : > { %v581_v20 = vpop.f32.mrf.mxu1 }
  0xea   : > { %v592_v22 = vpop.f32.mrf.mxu2 }
  0xeb   : > { %v593_v24 = vadd.f32 %v592_v22, %v425_v23 }
  0xec   : > { %782 = vrot.lane.b32.xlu2 %v597_v16, %s1630_s13  ;;  %654 = vrot.lane.b32.xlu1 %v596_v21, %s1629_s3 }
  0xed   : > { %1200 = vmatmul.msk.bf16.vlgmr.msra.gmra.mxu3 %vm599_vm0, %v596_v21  ;;  %v1827_v26 = vpack.c.bf16 %v593_v24, %v593_v24 }
  0xef   : > { %v637_v27 = vsel %vm635_vm1, %v1827_v26, 0 }
  0xf0   : > { %646 = vmatpush.bf16.msrb.mxu3 %v637_v27 }
  0xf2   : > { %v594_v25 = vpop.f32.mrf.mxu2 }
  0xf4   : > { %780 = vrot.lane.b32.xlu1 %v596_v21, %s1630_s13 }
 0x13e   : > { %v721_v28 = vpop.permute.xlu2 %720 }
 0x13f   : > { %v726_v29 = vsel %vm599_vm0, %v721_v28, 0 }
 0x140   : > { %735 = vmatpush.bf16.xpose.msrb.mxu2 %v726_v29 }
 0x146   : > { %v783_v45 = vpop.permute.xlu2 %782 }
 0x147   : > { %v788_v47 = vsel %vm599_vm0, %v783_v45, 0  ;;  %v1271_v45 = vld [vmem:[#allocation9 + $0x18] sm:$0xff] }
 0x156   : > { %v658_v30 = vpop.permute.xlu1 %657 }
 0x157   : > { %v663_v31 = vsel %vm599_vm0, %v658_v30, 0 }
 0x158   : > { %672 = vmatpush.bf16.xpose.msra.mxu3 %v663_v31 }
 0x15e   : > { %v655_v49 = vpop.permute.xlu1 %654 }
 0x166   : > { %v781_v50 = vpop.permute.xlu1 %780 }
 0x170   : > { %v615_v33 = vpop.f32.mrf.mxu3 }
 0x171   : > { %v616_v34 = vadd.f32 %v615_v33, %v386_v32 }
 0x173   : > { %v620_v35 = vsel %vm619_vm2, %v616_v34, -inf }
 0x174   : > { %621 = vmax.xlane.f32.xlu0 %v620_v35 }
 0x178   : > { %v617_v36 = vpop.f32.mrf.mxu3 }
 0x1e7   : > { %v622_v37 = vpop.xlane.xlu0 %621 }
 0x1e8   : > { %v623_v38 = vsub.f32 %v616_v34, %v622_v37 }
 0x1ea   : > { %v624_v39 = vmul.f32 1.442695, %v623_v38 }
 0x1ec   : > { %1374 = vpow2.f32 %v624_v39 }
 0x1f2   : > { %v1375_v40 = vpop.eup %1374 }
 0x1f3   : > { %v626_v41 = vsel %vm619_vm2, %v1375_v40, 0.0 }
 0x1f4   : > { %627 = vadd.xlane.f32.xlu0 %v626_v41  ;;  %v1275_v41 = vld [vmem:[#allocation9 + $0x38] sm:$0xff] }
 0x1f5   : > { %912 = vmatpush.bf16.msrb.mxu1 %v1275_v41 }
 0x208   : > { %718 = vrot.lane.b32.xlu0 %v596_v21, %s1628_s1 }
 0x267   : > { %v628_v42 = vpop.xlane.xlu0 %627 }
 0x268   : > { %1376 = vrcp.f32 %v628_v42  ;;  %v1274_v42 = vld [vmem:[#allocation9 + $0x30] sm:$0xff] }
 0x269   : > { %913 = vmatpush.bf16.msrb.mxu1 %v1274_v42 }
 0x26e   : > { %v1377_v43 = vpop.eup %1376 }
 0x26f   : > { %v630_v44 = vmul.f32 %v1377_v43, %v1375_v40  ;;  %v1273_v43 = vld [vmem:[#allocation9 + $0x28] sm:$0xff] }
 0x270   : > { %914 = vmatpush.bf16.msrb.mxu1 %v1273_v43 }
 0x271   : > { %v631_v46 = vpack.c.bf16 %v630_v44, %v630_v44  ;;  %v1272_v44 = vld [vmem:[#allocation9 + $0x20] sm:$0xff] }
 0x273   : > { %1201 = vmatmul.msk.bf16.vlgmr.msrb.gmra.mxu3 %vm619_vm2, %v631_v46  ;;  %v1270_v46 = vld [vmem:[#allocation9 + $0x10] sm:$0xff] }
 0x274   : > { %797 = vmatpush.bf16.xpose.msrb.mxu3 %v788_v47  ;;  %915 = vmatpush.bf16.msrb.mxu1 %v1272_v44 }
 0x278   : > { %916 = vmatpush.bf16.msrb.mxu1 %v1271_v45 }
 0x27a   : > { %v719_v48 = vpop.permute.xlu0 %718 }
 0x27b   : > { %1204 = vmatmul.msk.bf16.vlgmr.msrb.gmra.mxu2 %vm599_vm0, %v719_v48 }
 0x27c   : > { %917 = vmatpush.bf16.msrb.mxu1 %v1270_v46 }
 0x283   : > { %1202 = vmatmul.msk.bf16.vlgmr.msra.gmra.mxu3 %vm599_vm0, %v655_v49  ;;  %v1269_v49 = vld [vmem:[#allocation9 + $0x8] sm:$0xff] }
 0x284   : > { %918 = vmatpush.bf16.msrb.mxu1 %v1269_v49 }
 0x293   : > { %1206 = vmatmul.msk.bf16.vlgmr.msrb.gmra.mxu3 %vm599_vm0, %v781_v50  ;;  %v1268_v50 = vld [vmem:[#allocation9] sm:$0xff] }
 0x294   : > { %919 = vmatpush.bf16.msrb.mxu1 %v1268_v50 }
 0x2f6   : > { %v648_v51 = vpop.f32.mrf.mxu3 }
 0x2f7   : > { %652 = vst.msk [vmem:[#allocation2] sm:$0xff] %vm599_vm0, %v648_v51 }
 0x2fe   : > { %v650_v52 = vpop.f32.mrf.mxu3  ;;  %v737_v53 = vpop.f32.mrf.mxu2 }
 0x2ff   : > { %v738_v54 = vadd.f32 %v737_v53, %v386_v32 }
 0x301   : > { %v741_v55 = vsel %vm619_vm2, %v738_v54, -inf }
 0x302   : > { %742 = vmax.xlane.f32.xlu1 %v741_v55 }
 0x306   : > { %v674_v56 = vpop.f32.mrf.mxu3  ;;  %v739_v57 = vpop.f32.mrf.mxu2 }
 0x307   : > { %v675_v58 = vadd.f32 %v674_v56, %v386_v32 }
 0x309   : > { %v678_v59 = vsel %vm619_vm2, %v675_v58, -inf }
 0x30a   : > { %679 = vmax.xlane.f32.xlu2 %v678_v59  ;;  %v1631_v59 = vmov 128.0  }
 0x30e   : > { %v676_v60 = vpop.f32.mrf.mxu3 }
 0x316   : > { %v799_v61 = vpop.f32.mrf.mxu3 }
 0x317   : > { %v800_v63 = vadd.f32 %v799_v61, %v386_v32 }
 0x319   : > { %v803_v0 = vsel %vm619_vm2, %v800_v63, -inf }
 0x31a   : > { %804 = vmax.xlane.f32.xlu0 %v803_v0 }
 0x31e   : > { %v801_v1 = vpop.f32.mrf.mxu3 }
 0x32e   : > { %753 = vrot.lane.b32.xlu0 %v1827_v26, %s1628_s1 }
 0x375   : > { %v743_v2 = vpop.xlane.xlu1 %742 }
 0x376   : > { %v744_v3 = vsub.f32 %v738_v54, %v743_v2  ;;  %v1371_v54 = vld [vmem:[%s1912_s4] ss:$0 sm:$0xff] }
 0x378   : > { %v745_v4 = vmul.f32 1.442695, %v744_v3 }
 0x37a   : > { %1378 = vpow2.f32 %v745_v4 }
 0x37d   : > { %v680_v5 = vpop.xlane.xlu2 %679 }
 0x37e   : > { %v681_v6 = vsub.f32 %v675_v58, %v680_v5 }
 0x380   : > { %v1379_v7 = vpop.eup %1378  ;;  %v682_v8 = vmul.f32 1.442695, %v681_v6 }
 0x381   : > { %v747_v9 = vsel %vm619_vm2, %v1379_v7, 0.0 }
 0x382   : > { %1380 = vpow2.f32 %v682_v8  ;;  %748 = vadd.xlane.f32.xlu1 %v747_v9 }
 0x388   : > { %v1381_v10 = vpop.eup %1380 }
 0x389   : > { %v684_v11 = vsel %vm619_vm2, %v1381_v10, 0.0 }
 0x38a   : > { %685 = vadd.xlane.f32.xlu2 %v684_v11 }
 0x38d   : > { %v805_v12 = vpop.xlane.xlu0 %804 }
 0x38e   : > { %v806_v13 = vsub.f32 %v800_v63, %v805_v12 }
 0x390   : > { %v807_v14 = vmul.f32 1.442695, %v806_v13 }
 0x392   : > { %1382 = vpow2.f32 %v807_v14 }
 0x398   : > { %v1383_v15 = vpop.eup %1382 }
 0x399   : > { %v809_v16 = vsel %vm619_vm2, %v1383_v15, 0.0 }
 0x39a   : > { %810 = vadd.xlane.f32.xlu1 %v809_v16 }
 0x3a0   : > { %v754_v17 = vpop.permute.xlu0 %753 }
 0x3a1   : > { %v759_v18 = vsel %vm635_vm1, %v754_v17, 0 }
 0x3a2   : > { %691 = vrot.lane.b32.xlu2 %v1827_v26, %s1629_s3  ;;  %768 = vmatpush.bf16.msra.mxu2 %v759_v18  ;;  %v1373_v18 = vld [vmem:[%s1914_s6] ss:$0 sm:$0xff] }
 0x3b3   : > { %815 = vrot.lane.b32.xlu1 %v1827_v26, %s1630_s13 }
 0x3f5   : > { %v749_v19 = vpop.xlane.xlu1 %748 }
 0x3f6   : > { %1384 = vrcp.f32 %v749_v19 }
 0x3fc   : > { %v1385_v20 = vpop.eup %1384 }
 0x3fd   : > { %v751_v21 = vmul.f32 %v1385_v20, %v1379_v7  ;;  %v686_v22 = vpop.xlane.xlu2 %685 }
 0x3fe   : > { %1386 = vrcp.f32 %v686_v22 }
 0x3ff   : > { %v752_v23 = vpack.c.bf16 %v751_v21, %v751_v21 }
 0x401   : > { %1205 = vmatmul.msk.bf16.vlgmr.msra.gmra.mxu2 %vm619_vm2, %v752_v23 }
 0x404   : > { %v1387_v24 = vpop.eup %1386 }
 0x405   : > { %v688_v25 = vmul.f32 %v1387_v24, %v1381_v10  ;;  %v692_v27 = vpop.permute.xlu2 %691 }
 0x406   : > { %v697_v28 = vsel %vm635_vm1, %v692_v27, 0 }
 0x407   : > { %706 = vmatpush.bf16.msrb.mxu0 %v697_v28  ;;  %v689_v29 = vpack.c.bf16 %v688_v25, %v688_v25 }
 0x40a   : > { %1203 = vmatmul.msk.bf16.vlgmr.msrb.gmra.mxu0 %vm619_vm2, %v689_v29 }
 0x40d   : > { %v811_v30 = vpop.xlane.xlu1 %810 }
 0x40e   : > { %1388 = vrcp.f32 %v811_v30 }
 0x40f   : > { %1390 = vrcp.f32 %v1631_v59 }
 0x414   : > { %v1389_v26 = vpop.eup %1388 }
 0x415   : > { %v813_v31 = vmul.f32 %v1389_v26, %v1383_v15  ;;  %v1391_v60 = vpop.eup %1390  ;;  %v1372_v15 = vld [vmem:[%s1913_s5] ss:$0 sm:$0xff] }
 0x416   : > { %v929_v61 = vmul.f32 128.0, %v1391_v60  ;;  %vm933_vm6 = vweird.f32 %v1391_v60 }
 0x417   : > { %v814_v34 = vpack.c.bf16 %v813_v31, %v813_v31 }
 0x418   : > { %v930_v63 = vsub.f32 1.0, %v929_v61 }
 0x41a   : > { %v931_v0 = vmul.f32 %v1391_v60, %v930_v63 }
 0x41c   : > { %v932_v1 = vadd.f32 %v1391_v60, %v931_v0 }
 0x41e   : > { %v934_v2 = vsel %vm933_vm6, %v1391_v60, %v932_v1 }
 0x425   : > { %v816_v32 = vpop.permute.xlu1 %815 }
 0x426   : > { %v821_v33 = vsel %vm635_vm1, %v816_v32, 0 }
 0x427   : > { %830 = vmatpush.bf16.msra.mxu0 %v821_v33 }
 0x42a   : > { %1207 = vmatmul.msk.bf16.vlgmr.msra.gmra.mxu0 %vm619_vm2, %v814_v34 }
 0x484   : > { %v770_v35 = vpop.f32.mrf.mxu2 }
 0x487   : > { %v708_v36 = vpop.f32.mrf.mxu0 }
 0x488   : > { %713 = vrot.lane.b32.xlu2 %v708_v36, %s1630_s13 }
 0x48c   : > { %v772_v37 = vpop.f32.mrf.mxu2 }
 0x48f   : > { %v710_v38 = vpop.f32.mrf.mxu0 }
 0x490   : > { %775 = vrot.lane.b32.xlu2 %v770_v35, %s1628_s1  ;;  %s979_s1 = sshll.u32 %s975_s17, 4  ;;  %s980_s1 = int_to_ptr.hbm [resolvable:$true] %s979_s1 }
 0x491   : > { %s1558_s13 = sshra.s32 %s980_s1, 4  ;;  %s1559_s13 = int_to_ptr.hbm [resolvable:$true] %s1558_s13 }
 0x492   : > { %s1560_s19 = scalar_lea.hbm %s1559_s13, 8  ;;  %p1565_p12 = scmp.lt.s32.totalorder %s1559_s13, %s1916_s8 }
 0x493   : > { %p1561_p1 = scmp.ne.s32.totalorder %s1559_s13, %s1560_s19  ;;  %p1566_p7 = scmp.lt.s32.totalorder %s1564_s21, %s1560_s19 }
 0x495   : > { %p1562_p3 = pnand %p1561_p1, %p1764_p4  ;;  %p1567_p8 = por %p1566_p7, %p1565_p12 }
 0x497   : > { %p1563_p5 = pneg %p1562_p3 }
 0x499   : > { %p1568_p9 = pnand %p1567_p8, %p1563_p5 }
 0x4a7   : > { %v832_v39 = vpop.f32.mrf.mxu0 }
 0x4a8   : > { %837 = vrot.lane.b32.xlu0 %v832_v39, %s1629_s3  ;;  %s965_s3 = scalar_lea.sflag [#allocation5], %s1795_s9 }
 0x4af   : > { %v834_v40 = vpop.f32.mrf.mxu0 }
 0x4e2   : > { %v714_v47 = vpop.permute.xlu2 %713 }
 0x4e3   : > { %717 = vst.msk [vmem:[#allocation2] sm:$0xff] %vm716_vm3, %v714_v47 }
 0x4ea   : > { %v776_v48 = vpop.permute.xlu2 %775 }
 0x4eb   : > { %779 = vst.msk [vmem:[#allocation2] sm:$0xff] %vm778_vm4, %v776_v48 }
 0x51a   : > { %v838_v51 = vpop.permute.xlu0 %837 }
 0x51b   : > { %841 = vst.msk [vmem:[#allocation2] sm:$0xff] %vm840_vm5, %v838_v51 }
 0x522   : > { %v842_v52 = vld [vmem:[#allocation2] sm:$0xff] }
 0x523   : > { %v843_v53 = vpack.c.bf16 %v842_v52, %v842_v52 }
 0x525   : > { %920 = vmatmul.bf16.vlgmr.msrb.gmra.mxu1 %v843_v53 }
 0x5a2   : > { %v921_v55 = vpop.f32.mrf.mxu1 }
 0x5a3   : > { %v922_v56 = vadd.f32 %v1371_v54, %v921_v55 }
 0x5a5   : > { %v925_v57 = vadd.f32 %v922_v56, %v1816_v62 }
 0x5a7   : > { %926 = vadd.xlane.f32.xlu2 %v925_v57 }
 0x5aa   : > { %v923_v58 = vpop.f32.mrf.mxu1 }
 0x61a   : > { %v927_v3 = vpop.xlane.xlu2 %926 }
 0x61b   : > { %v935_v4 = vmul.f32 %v934_v2, %v927_v3 }
 0x61d   : > { %v936_v5 = vsub.f32 %v925_v57, %v935_v4 }
 0x61f   : > { %v937_v6 = vmul.f32 %v936_v5, %v936_v5 }
 0x621   : > { %938 = vadd.xlane.f32.xlu0 %v937_v6 }
 0x694   : > { %v939_v7 = vpop.xlane.xlu0 %938 }
 0x695   : > { %v940_v8 = vmul.f32 %v939_v7, %v934_v2 }
 0x697   : > { %v941_v62 = vadd.f32 1e-05, %v940_v8 }
 0x699   : > { %1392 = vrsqrt.f32 %v941_v62  ;;  %vm948_vm8 = vweird.f32 %v941_v62 }
 0x69f   : > { %v1393_v9 = vpop.eup %1392 }
 0x6a0   : > { %v943_v10 = vmul.f32 %v1393_v9, %v941_v62  ;;  %vm949_vm7 = vweird.f32 %v1393_v9 }
 0x6a1   : > { %vm950_vm9 = vmor %vm948_vm8, %vm949_vm7 }
 0x6a2   : > { %v944_v11 = vmul.f32 %v1393_v9, %v943_v10 }
 0x6a4   : > { %v945_v12 = vmul.f32 0.5, %v944_v11 }
 0x6a6   : > { %v946_v13 = vsub.f32 1.5, %v945_v12 }
 0x6a8   : > { %v947_v14 = vmul.f32 %v1393_v9, %v946_v13 }
 0x6aa   : > { %v951_v16 = vsel %vm950_vm9, %v1393_v9, %v947_v14 }
 0x6ab   : > { %v952_v17 = vmul.f32 %v951_v16, %v936_v5 }
 0x6ad   : > { %v957_v19 = vmul.f32 %v1372_v15, %v952_v17 }
 0x6af   : > { %v962_v20 = vadd.f32 %v1373_v18, %v957_v19 }
 0x6b1   : > { %963 = vst [vmem:[%s384_s12] sm:$0xff] %v962_v20 }
 0x6b2   : > { %1571 = shalt.err (!%p1568_p9)
}
 0x6b3   : > { %1294 = dma.vmem_to_hbm [thread:$0]  (%p1764_p4), %s978_s2, 128, %s980_s1, %s965_s3  }
 0x6b4 PF: > { %s991_s9 = sand.u32 1, %s1606_s27   ;;  %p1930_p10 = scmp.ge.s32.totalorder %s1618_s30, 2 }
 0x6b5   : > { %s992_s15 = scalar_lea.sflag [#allocation5], %s991_s9 }
 0x6b6   : > { %p1314_p13 = pnand %p1930_p10, %p1768_p6 }
 0x6b8   : > { %p1315_p11 = pneg %p1314_p13 }
 0x6ba   : > { %1601 = dma.done.wait (%p1315_p11), %s992_s15, 128  }
 0x6bb   : > { %1603 = vsyncadd (%p1315_p11), %s992_s15, 4294967168  ;;  %p23_p0 = scmp.ge.s32.totalorder %s1738_s22, 4   ;;  %s1931_s27 = smov %s1610_s28 }
 0x6bc   : > { %s1932_s28 = smov %s1614_s29  ;;  %s1933_s29 = smov %s1749_s25 }
 0x6bd   : > { %s1934_s30 = smov %s1738_s22  ;;  %25 = sbr.rel (!%p23_p0) target bundleno = 11 (0xb), region = 113 }
 0x6c2   :  { %998 = vsyncpa [#allocation4], 1 }
 0x6c3   :  { %1000 = vsyncpa [#allocation4 + $0x1], 1 }
 0x6c4   :  { %1001 = vsyncpa [#allocation7], 1 }
 0x6c5   :  { %1002 = vsyncpa [#allocation10], 1 }
 0x6c6   :  { %1003 = vsyncpa [#allocation5], 1 }
 0x6c7   :  { %1005 = vsyncpa [#allocation5 + $0x1], 1 }

// kernel: tpu_custom_call.1
= control target key start
LH: loop header
LB: loop body
LE: loop exit
PB: predicated region body
PF: predicated region fallthrough
CT: control target
= control target key end

     0   :  { %s1908_s0 = inlined_call_operand.hbm [shape: f32[2,8,128], index: 0, kind: input, shape index: {}]   ;;  %s1909_s1 = inlined_call_operand.hbm [shape: bf16[128,384], index: 1, kind: input, shape index: {}]   ;;  %s1910_s2 = inlined_call_operand.hbm [shape: f32[1,384], index: 2, kind: input, shape index: {}]   ;;  %s1911_s3 = inlined_call_operand.hbm [shape: bf16[128,128], index: 3, kind: input, shape index: {}]   ;;  %s1912_s4 = inlined_call_operand.vmem [shape: f32[1,128], index: 4, kind: input, shape index: {}]   ;;  %s1913_s5 = inlined_call_operand.vmem [shape: f32[1,128], index: 5, kind: input, shape index: {}]   ;;  %s1914_s6 = inlined_call_operand.vmem [shape: f32[1,128], index: 6, kind: input, shape index: {}]   ;;  %s1915_s7 = inlined_call_operand.hbm [shape: f32[8,8], index: 7, kind: input, shape index: {}]   ;;  %s1916_s8 = inlined_call_operand.hbm [shape: f32[2,8,128], index: 8, kind: output, shape index: {}]  }
   0x1   :  { %1917 = sst [smem:[#allocation17_spill]] %s1909_s1 }
   0x2   :  { %1918 = sst [smem:[#allocation18_spill]] %s1910_s2 }
   0x3   :  { %1919 = sst [smem:[#allocation19_spill]] %s1911_s3 }
   0x4   :  { %13 = vsyncpa [#allocation4], 0 }
   0x5   :  { %15 = vsyncpa [#allocation4 + $0x1], 0 }
   0x6   :  { %16 = vsyncpa [#allocation7], 0 }
   0x7   :  { %17 = vsyncpa [#allocation10], 0 }
   0x8   :  { %18 = vsyncpa [#allocation5], 0 }
   0x9   :  { %20 = vsyncpa [#allocation5 + $0x1], 0  ;;  %s1677_s27 = smov 0   ;;  %s1679_s28 = smov 0  }
   0xa   :  { %s1681_s29 = smov 0   ;;  %s1683_s30 = smov 0  }
   0xb LB: > { %s1920_s1 = sld [smem:[#allocation17_spill]]  ;;  %s1701_s12 = sadd.s32 4294967295, %s1618_s30   ;;  %s1618_s30 = sphi %s1683_s30, %s1934_s30   ;;  %s1614_s29 = sphi %s1681_s29, %s1933_s29   ;;  %s1610_s28 = sphi %s1679_s28, %s1932_s28   ;;  %s1606_s27 = sphi %s1677_s27, %s1931_s27  }
   0xc   : > { %p1089_p0 = scmp.ge.s32.totalorder %s1618_s30, 1  ;;  %p47_p1 = scmp.eq.s32.totalorder %s1701_s12, 0 }
   0xd   : > { %p230_p2 = scmp.lt.s32.totalorder %s1618_s30, 3  ;;  %s1620_s14 = smov [#allocation6]  }
   0xe   : > { %s243_s15 = sshll.u32 %s1620_s14, 4  ;;  %s1922_s3 = sld [smem:[#allocation19_spill]]  ;;  %s244_s15 = int_to_ptr.vmem [resolvable:$true] %s243_s15 }
   0xf   : > { %p1706_p3 = pnand %p1089_p0, %p230_p2  ;;  %s1621_s20 = smov [#allocation9]  }
  0x10   : > { %s269_s21 = sshll.u32 %s1621_s20, 4  ;;  %s1622_s22 = smov 192   ;;  %s270_s21 = int_to_ptr.vmem [resolvable:$true] %s269_s21 }
  0x11   : > { %s241_s11 = sshll.u32 %s1920_s1, 4  ;;  %p1296_p4 = pneg %p1706_p3  ;;  %s242_s11 = int_to_ptr.hbm [resolvable:$true] %s241_s11 }
  0x12   : > { %s1623_s23 = smov 12   ;;  %s1624_s24 = smov 64  }
  0x13   : > { %p1718_p6 = pnand %p1296_p4, %p47_p1  ;;  %s1625_s25 = smov 4  }
  0x14   : > { %s267_s18 = sshll.u32 %s1922_s3, 4  ;;  %s1924_s2 = sld [smem:[#allocation18_spill]]  ;;  %s268_s18 = int_to_ptr.hbm [resolvable:$true] %s267_s18 }
  0x15   : > { %1299 = dma.hbm_to_vmem [thread:$0]  (!%p1718_p6), %s242_s11, 3072, %s244_s15, [#allocation7], %s1622_s22, %s1622_s22, %s1623_s23  }
  0x16   : > { %1305 = dma.hbm_to_vmem [thread:$0]  (!%p1718_p6), %s268_s18, 1024, %s270_s21, [#allocation10], %s1624_s24, %s1624_s24, %s1625_s25  }
  0x17   : > { %s1626_s14 = smov [#allocation8]   ;;  %s291_s17 = sshll.u32 %s1915_s7, 4  ;;  %s292_s17 = int_to_ptr.hbm [resolvable:$true] %s291_s17 }
  0x18   : > { %s258_s11 = sshll.u32 %s1626_s14, 4  ;;  %s1627_s18 = smov [#allocation11]   ;;  %s259_s11 = int_to_ptr.vmem [resolvable:$true] %s258_s11 }
  0x19   : > { %s293_s20 = sshll.u32 %s1627_s18, 4  ;;  %s1088_s21 = sadd.s32 4294967294, %s1618_s30   ;;  %s294_s20 = int_to_ptr.vmem [resolvable:$true] %s293_s20 }
  0x1a   : > { %s256_s10 = sshll.u32 %s1924_s2, 4  ;;  %s1738_s22 = sadd.s32 1, %s1618_s30   ;;  %s257_s10 = int_to_ptr.hbm [resolvable:$true] %s256_s10 }
  0x1b   : > { %1302 = dma.hbm_to_vmem [thread:$0]  (!%p1718_p6), %s257_s10, 48, %s259_s11, [#allocation7]  }
  0x1c   : > { %1308 = dma.hbm_to_vmem [thread:$0]  (!%p1718_p6), %s292_s17, 128, %s294_s20, [#allocation10]  }
  0x1d   : > { %s30_s23 = ssub.s32 %s1618_s30, %s1738_s22  ;;  %s33_s24 = sadd.s32 1, %s1614_s29 }
  0x1e   : > { %p31_p7 = scmp.eq.s32.totalorder %s30_s23, 0  ;;  %p40_p8 = scmp.ne.s32.totalorder %s1614_s29, %s1610_s28 }
  0x1f   : > { %p41_p9 = scmp.eq.s32.totalorder %s1618_s30, 0  ;;  %p46_p10 = scmp.ne.s32.totalorder %s1610_s28, %s1606_s27 }
  0x20   : > { %s1749_s25 = scalar_select %p31_p7, %s1614_s29, %s33_s24  }
  0x21   : > { %p1751_p11 = por %p41_p9, %p40_p8  ;;  %p1757_p12 = por %p47_p1, %p46_p10 }
  0x22   : > { %p217_p13 = scmp.eq.s32.totalorder %s1701_s12, 1  ;;  %p223_p0 = scmp.eq.s32.totalorder %s1088_s21, 1 }
  0x23   : > { %p1321_p2 = scmp.lt.s32.totalorder %s1618_s30, 2  ;;  %s304_s9 = sand.u32 1, %s1614_s29  }
  0x24   : > { %p1764_p4 = por %p217_p13, %p40_p8  ;;  %p1768_p6 = por %p223_p0, %p46_p10 }
  0x25   : > { %s1095_s11 = sshll.u32 %s304_s9, 3  ;;  %s1096_s15 = sshll.u32 %s1618_s30, 3 }
  0x26   : > { %s312_s18 = scalar_lea.hbm %s1908_s0, %s1096_s15  ;;  %s308_s20 = scalar_lea.vmem [#allocation3], %s1095_s11 }
  0x27   : > { %s316_s23 = sshll.u32 %s308_s20, 4  ;;  %s314_s24 = sshll.u32 %s312_s18, 4  ;;  %s317_s23 = int_to_ptr.vmem [resolvable:$true] %s316_s23  ;;  %s315_s24 = int_to_ptr.hbm [resolvable:$true] %s314_s24 }
  0x28   : > { %p1778_p7 = pnand %p1321_p2, %p1751_p11  ;;  %s305_s1 = scalar_lea.sflag [#allocation4], %s304_s9 }
  0x29   : > { %s1514_s2 = sshra.s32 %s315_s24, 4  ;;  %s1521_s16 = scalar_lea.hbm %s1908_s0, 16  ;;  %s1515_s2 = int_to_ptr.hbm [resolvable:$true] %s1514_s2 }
  0x2a   : > { %s1516_s3 = scalar_lea.hbm %s1515_s2, 8  ;;  %p1518_p9 = pneg %p1778_p7 }
  0x2b   : > { %p1517_p8 = scmp.ne.s32.totalorder %s1515_s2, %s1516_s3  ;;  %p1522_p11 = scmp.lt.s32.totalorder %s1515_s2, %s1908_s0 }
  0x2c   : > { %p1523_p0 = scmp.lt.s32.totalorder %s1521_s16, %s1516_s3 }
  0x2d   : > { %p1519_p10 = pnand %p1518_p9, %p1517_p8 }
  0x2e   : > { %p1524_p2 = por %p1523_p0, %p1522_p11 }
  0x2f   : > { %p1520_p13 = pneg %p1519_p10 }
  0x31   : > { %p1525_p5 = pnand %p1524_p2, %p1520_p13 }
  0x33   : > { %1528 = shalt.err (!%p1525_p5)
}
  0x34   : > { %1312 = dma.hbm_to_vmem [thread:$0]  (!%p1778_p7), %s315_s24, 128, %s317_s23, %s305_s1  }
  0x35   : > { %325 = sbr.rel (%p1706_p3) target bundleno = 1716 (0x6b4), region = 52  ;;  %s1795_s9 = sand.u32 (!%p1706_p3), 1, %s1610_s28  }
  0x36   : > { %s1098_s18 = sshll.u32 (!%p1706_p3), %s1795_s9, 3  ;;  %s328_s20 = scalar_lea.sflag (!%p1706_p3), [#allocation4], %s1795_s9 }
  0x37   : > { %s1801_s2 = scalar_lea.vmem (!%p1706_p3), [#allocation3], %s1098_s18 }
  0x3a   : > { %1589 = dma.done.wait (%p1757_p12), %s328_s20, 128  }
  0x3b   : > { %1591 = vsyncadd (%p1757_p12), %s328_s20, 4294967168 }
  0x3c   : > { %1593 = dma.done.wait (%p47_p1), [#allocation7], 3120  }
  0x3d   : > { %1595 = vsyncadd (%p47_p1), [#allocation7], 4294964176 }
  0x3e   : > { %1597 = dma.done.wait (%p47_p1), [#allocation10], 1152  }
  0x3f   : > { %1599 = vsyncadd (%p47_p1), [#allocation10], 4294966144  ;;  %v1190_v0 = vld [vmem:[#allocation6 + $0xa8] sm:$0xf]  ;;  %v1266_v1 = vld [vmem:[#allocation6 + $0xb0] sm:$0xf0] }
  0x40   : > { %v1265_v2 = vld [vmem:[#allocation6 + $0xac] sm:$0xf]  ;;  %v1191_v3 = vor.u32 %v1266_v1, %v1190_v0  ;;  %v1192_v4 = vld [vmem:[#allocation6 + $0xb4] sm:$0xf0]  ;;  %v1178_v5 = vld [vmem:[#allocation6 + $0x90] sm:$0xf] }
  0x41   : > { %v1263_v6 = vld [vmem:[#allocation6 + $0x98] sm:$0xf0]  ;;  %v1195_v7 = vor.u32 %v1265_v2, %v1192_v4  ;;  %v1262_v8 = vld [vmem:[#allocation6 + $0x94] sm:$0xf]  ;;  %v1180_v9 = vld [vmem:[#allocation6 + $0x9c] sm:$0xf0] }
  0x42   : > { %557 = vmatpush.bf16.msra.mxu0 %v1191_v3  ;;  %v1179_v10 = vor.u32 %v1263_v6, %v1178_v5  ;;  %v1183_v11 = vor.u32 %v1262_v8, %v1180_v9  ;;  %v1166_v12 = vld [vmem:[#allocation6 + $0x78] sm:$0xf]  ;;  %v1260_v13 = vld [vmem:[#allocation6 + $0x80] sm:$0xf0]  ;;  %v1259_v14 = vld [vmem:[#allocation6 + $0x7c] sm:$0xf] }
  0x43   : > { %570 = vmatpush.bf16.msra.mxu1 %v1195_v7  ;;  %v1168_v15 = vld [vmem:[#allocation6 + $0x84] sm:$0xf0]  ;;  %v1167_v16 = vor.u32 %v1260_v13, %v1166_v12  ;;  %v1154_v18 = vld [vmem:[#allocation6 + $0x60] sm:$0xf]  ;;  %v1257_v19 = vld [vmem:[#allocation6 + $0x68] sm:$0xf0] }
  0x44   : > { %v1171_v17 = vor.u32 %v1259_v14, %v1168_v15  ;;  %v1256_v20 = vld [vmem:[#allocation6 + $0x64] sm:$0xf]  ;;  %v1156_v21 = vld [vmem:[#allocation6 + $0x6c] sm:$0xf0]  ;;  %v1155_v22 = vor.u32 %v1257_v19, %v1154_v18  ;;  %v1267_v24 = vld [vmem:[#allocation6 + $0xb8] sm:$0xf0] }
  0x45   : > { %v1198_v23 = vld [vmem:[#allocation6 + $0xb0] sm:$0xf]  ;;  %v1186_v25 = vld [vmem:[#allocation6 + $0x98] sm:$0xf]  ;;  %v1159_v26 = vor.u32 %v1256_v20, %v1156_v21  ;;  %v1142_v27 = vld [vmem:[#allocation6 + $0x48] sm:$0xf] }
  0x46   : > { %558 = vmatpush.bf16.msra.mxu0 %v1179_v10  ;;  %v1254_v28 = vld [vmem:[#allocation6 + $0x50] sm:$0xf0]  ;;  %v1199_v29 = vor.u32 %v1267_v24, %v1198_v23  ;;  %v1264_v30 = vld [vmem:[#allocation6 + $0xa0] sm:$0xf0]  ;;  %v1253_v31 = vld [vmem:[#allocation6 + $0x4c] sm:$0xf] }
  0x47   : > { %571 = vmatpush.bf16.msra.mxu1 %v1183_v11  ;;  %v1144_v32 = vld [vmem:[#allocation6 + $0x54] sm:$0xf0]  ;;  %v1187_v33 = vor.u32 %v1264_v30, %v1186_v25  ;;  %v1143_v34 = vor.u32 %v1254_v28, %v1142_v27  ;;  %v1130_v35 = vld [vmem:[#allocation6 + $0x30] sm:$0xf]  ;;  %v1174_v36 = vld [vmem:[#allocation6 + $0x80] sm:$0xf] }
  0x48   : > { %583 = vmatpush.bf16.msra.mxu2 %v1199_v29  ;;  %v1261_v37 = vld [vmem:[#allocation6 + $0x88] sm:$0xf0]  ;;  %v1147_v38 = vor.u32 %v1253_v31, %v1144_v32  ;;  %v1251_v39 = vld [vmem:[#allocation6 + $0x38] sm:$0xf0]  ;;  %v1250_v40 = vld [vmem:[#allocation6 + $0x34] sm:$0xf] }
  0x49   : > { %v1132_v41 = vld [vmem:[#allocation6 + $0x3c] sm:$0xf0]  ;;  %v1175_v42 = vor.u32 %v1261_v37, %v1174_v36  ;;  %v1131_v43 = vor.u32 %v1251_v39, %v1130_v35  ;;  %v1162_v44 = vld [vmem:[#allocation6 + $0x68] sm:$0xf]  ;;  %v1258_v45 = vld [vmem:[#allocation6 + $0x70] sm:$0xf0] }
  0x4a   : > { %559 = vmatpush.bf16.msra.mxu0 %v1167_v16  ;;  %v1135_v46 = vor.u32 %v1250_v40, %v1132_v41  ;;  %v1118_v47 = vld [vmem:[#allocation6 + $0x18] sm:$0xf]  ;;  %v1248_v48 = vld [vmem:[#allocation6 + $0x20] sm:$0xf0]  ;;  %v1247_v49 = vld [vmem:[#allocation6 + $0x1c] sm:$0xf]  ;;  %v1163_v51 = vor.u32 %v1258_v45, %v1162_v44 }
  0x4b   : > { %572 = vmatpush.bf16.msra.mxu1 %v1171_v17  ;;  %v1120_v50 = vld [vmem:[#allocation6 + $0x24] sm:$0xf0]  ;;  %v1119_v52 = vor.u32 %v1248_v48, %v1118_v47  ;;  %v1150_v53 = vld [vmem:[#allocation6 + $0x50] sm:$0xf]  ;;  %v1255_v54 = vld [vmem:[#allocation6 + $0x58] sm:$0xf0] }
  0x4c   : > { %584 = vmatpush.bf16.msra.mxu2 %v1187_v33  ;;  %v1123_v55 = vor.u32 %v1247_v49, %v1120_v50  ;;  %v1106_v56 = vld [vmem:[#allocation6] sm:$0xf]  ;;  %v1245_v57 = vld [vmem:[#allocation6 + $0x8] sm:$0xf0]  ;;  %v1244_v58 = vld [vmem:[#allocation6 + $0x4] sm:$0xf]  ;;  %v1151_v60 = vor.u32 %v1255_v54, %v1150_v53 }
  0x4d   : > { %v1108_v59 = vld [vmem:[#allocation6 + $0xc] sm:$0xf0]  ;;  %v1107_v61 = vor.u32 %v1245_v57, %v1106_v56  ;;  %v1138_v63 = vld [vmem:[#allocation6 + $0x38] sm:$0xf]  ;;  %v1252_v0 = vld [vmem:[#allocation6 + $0x40] sm:$0xf0] }
  0x4e   : > { %560 = vmatpush.bf16.msra.mxu0 %v1155_v22  ;;  %v1816_v62 = vld [vmem:[%s1801_s2] sm:$0xff]  ;;  %v1111_v1 = vor.u32 %v1244_v58, %v1108_v59  ;;  %v1139_v3 = vor.u32 %v1252_v0, %v1138_v63  ;;  %v1126_v4 = vld [vmem:[#allocation6 + $0x20] sm:$0xf]  ;;  %v1249_v5 = vld [vmem:[#allocation6 + $0x28] sm:$0xf0]  ;;  %vm599_vm0 = vcmask 261120  }
  0x4f   : > { %573 = vmatpush.bf16.msra.mxu1 %v1159_v26  ;;  %v388_v2 = vpack.c.bf16 %v1816_v62, %v1816_v62  ;;  %v1127_v6 = vor.u32 %v1249_v5, %v1126_v4  ;;  %v1114_v7 = vld [vmem:[#allocation6 + $0x8] sm:$0xf]  ;;  %v1246_v8 = vld [vmem:[#allocation6 + $0x10] sm:$0xf0]  ;;  %v421_v10 = vld [vmem:[#allocation8] sm:$0x7] }
  0x50   : > { %585 = vmatpush.bf16.msra.mxu2 %v1175_v42  ;;  %v1115_v9 = vor.u32 %v1246_v8, %v1114_v7  ;;  %v424_v11 = vperm.slane %v421_v10, 1  ;;  %v423_v14 = vperm.slane %v421_v10, 0  ;;  %s1628_s1 = smov 64   ;;  %s1629_s3 = smov 96   ;;  %v425_v23 = vperm.slane %v421_v10, 2  ;;  %v386_v32 = vld [vmem:[#allocation11] sm:$0xff] }
  0x51   : > { %s1630_s13 = smov 32   ;;  %vm635_vm1 = vcmask 1043456   ;;  %vm619_vm2 = vcmask 64512   ;;  %vm716_vm3 = vcmask 523520   ;;  %vm778_vm4 = vcmask 785920   ;;  %s1241_s24 = sshll.u32 %s1701_s12, 3 }
  0x52   : > { %561 = vmatpush.bf16.msra.mxu0 %v1143_v34  ;;  %vm840_vm5 = vcmask 1048320   ;;  %s975_s17 = scalar_lea.hbm %s1916_s8, %s1241_s24  ;;  %s384_s12 = scalar_lea.vmem [#allocation12], %s1098_s18 }
  0x53   : > { %574 = vmatpush.bf16.msra.mxu1 %v1147_v38  ;;  %s977_s2 = sshll.u32 %s384_s12, 4  ;;  %s1564_s21 = scalar_lea.hbm %s1916_s8, 16  ;;  %s978_s2 = int_to_ptr.vmem [resolvable:$true] %s977_s2 }
  0x54   : > { %586 = vmatpush.bf16.msra.mxu2 %v1163_v51 }
  0x56   : > { %562 = vmatpush.bf16.msra.mxu0 %v1131_v43 }
  0x57   : > { %575 = vmatpush.bf16.msra.mxu1 %v1135_v46 }
  0x58   : > { %587 = vmatpush.bf16.msra.mxu2 %v1151_v60 }
  0x5a   : > { %563 = vmatpush.bf16.msra.mxu0 %v1119_v52 }
  0x5b   : > { %576 = vmatpush.bf16.msra.mxu1 %v1123_v55 }
  0x5c   : > { %588 = vmatpush.bf16.msra.mxu2 %v1139_v3 }
  0x5e   : > { %564 = vmatpush.bf16.msra.mxu0 %v1107_v61 }
  0x5f   : > { %577 = vmatpush.bf16.msra.mxu1 %v1111_v1 }
  0x60   : > { %589 = vmatpush.bf16.msra.mxu2 %v1127_v6 }
  0x61   : > { %565 = vmatmul.bf16.vlgmr.msra.gmra.mxu0 %v388_v2 }
  0x62   : > { %578 = vmatmul.bf16.vlgmr.msra.gmra.mxu1 %v388_v2 }
  0x64   : > { %590 = vmatpush.bf16.msra.mxu2 %v1115_v9 }
  0x67   : > { %591 = vmatmul.bf16.vlgmr.msra.gmra.mxu2 %v388_v2 }
  0xde   : > { %v566_v12 = vpop.f32.mrf.mxu0 }
  0xdf   : > { %v579_v13 = vpop.f32.mrf.mxu1  ;;  %v567_v17 = vadd.f32 %v566_v12, %v423_v14 }
  0xe0   : > { %v580_v15 = vadd.f32 %v579_v13, %v424_v11 }
  0xe1   : > { %v596_v21 = vpack.c.bf16 %v567_v17, %v567_v17 }
  0xe2   : > { %v597_v16 = vpack.c.bf16 %v580_v15, %v580_v15 }
  0xe4   : > { %720 = vrot.lane.b32.xlu2 %v597_v16, %s1628_s1  ;;  %657 = vrot.lane.b32.xlu1 %v597_v16, %s1629_s3  ;;  %v604_v18 = vsel %vm599_vm0, %v597_v16, 0 }
  0xe5   : > { %613 = vmatpush.bf16.xpose.msra.mxu3 %v604_v18 }
  0xe6   : > { %v568_v19 = vpop.f32.mrf.mxu0 }
  0xe7   : > { %v581_v20 = vpop.f32.mrf.mxu1 }
  0xea   : > { %v592_v22 = vpop.f32.mrf.mxu2 }
  0xeb   : > { %v593_v24 = vadd.f32 %v592_v22, %v425_v23 }
  0xec   : > { %782 = vrot.lane.b32.xlu2 %v597_v16, %s1630_s13  ;;  %654 = vrot.lane.b32.xlu1 %v596_v21, %s1629_s3 }
  0xed   : > { %1200 = vmatmul.msk.bf16.vlgmr.msra.gmra.mxu3 %vm599_vm0, %v596_v21  ;;  %v1827_v26 = vpack.c.bf16 %v593_v24, %v593_v24 }
  0xef   : > { %v637_v27 = vsel %vm635_vm1, %v1827_v26, 0 }
  0xf0   : > { %646 = vmatpush.bf16.msrb.mxu3 %v637_v27 }
  0xf2   : > { %v594_v25 = vpop.f32.mrf.mxu2 }
  0xf4   : > { %780 = vrot.lane.b32.xlu1 %v596_v21, %s1630_s13 }
 0x13e   : > { %v721_v28 = vpop.permute.xlu2 %720 }
 0x13f   : > { %v726_v29 = vsel %vm599_vm0, %v721_v28, 0 }
 0x140   : > { %735 = vmatpush.bf16.xpose.msrb.mxu2 %v726_v29 }
 0x146   : > { %v783_v45 = vpop.permute.xlu2 %782 }
 0x147   : > { %v788_v47 = vsel %vm599_vm0, %v783_v45, 0  ;;  %v1271_v45 = vld [vmem:[#allocation9 + $0x18] sm:$0xff] }
 0x156   : > { %v658_v30 = vpop.permute.xlu1 %657 }
 0x157   : > { %v663_v31 = vsel %vm599_vm0, %v658_v30, 0 }
 0x158   : > { %672 = vmatpush.bf16.xpose.msra.mxu3 %v663_v31 }
 0x15e   : > { %v655_v49 = vpop.permute.xlu1 %654 }
 0x166   : > { %v781_v50 = vpop.permute.xlu1 %780 }
 0x170   : > { %v615_v33 = vpop.f32.mrf.mxu3 }
 0x171   : > { %v616_v34 = vadd.f32 %v615_v33, %v386_v32 }
 0x173   : > { %v620_v35 = vsel %vm619_vm2, %v616_v34, -inf }
 0x174   : > { %621 = vmax.xlane.f32.xlu0 %v620_v35 }
 0x178   : > { %v617_v36 = vpop.f32.mrf.mxu3 }
 0x1e7   : > { %v622_v37 = vpop.xlane.xlu0 %621 }
 0x1e8   : > { %v623_v38 = vsub.f32 %v616_v34, %v622_v37 }
 0x1ea   : > { %v624_v39 = vmul.f32 1.442695, %v623_v38 }
 0x1ec   : > { %1374 = vpow2.f32 %v624_v39 }
 0x1f2   : > { %v1375_v40 = vpop.eup %1374 }
 0x1f3   : > { %v626_v41 = vsel %vm619_vm2, %v1375_v40, 0.0 }
 0x1f4   : > { %627 = vadd.xlane.f32.xlu0 %v626_v41  ;;  %v1275_v41 = vld [vmem:[#allocation9 + $0x38] sm:$0xff] }
 0x1f5   : > { %912 = vmatpush.bf16.msrb.mxu1 %v1275_v41 }
 0x208   : > { %718 = vrot.lane.b32.xlu0 %v596_v21, %s1628_s1 }
 0x267   : > { %v628_v42 = vpop.xlane.xlu0 %627 }
 0x268   : > { %1376 = vrcp.f32 %v628_v42  ;;  %v1274_v42 = vld [vmem:[#allocation9 + $0x30] sm:$0xff] }
 0x269   : > { %913 = vmatpush.bf16.msrb.mxu1 %v1274_v42 }
 0x26e   : > { %v1377_v43 = vpop.eup %1376 }
 0x26f   : > { %v630_v44 = vmul.f32 %v1377_v43, %v1375_v40  ;;  %v1273_v43 = vld [vmem:[#allocation9 + $0x28] sm:$0xff] }
 0x270   : > { %914 = vmatpush.bf16.msrb.mxu1 %v1273_v43 }
 0x271   : > { %v631_v46 = vpack.c.bf16 %v630_v44, %v630_v44  ;;  %v1272_v44 = vld [vmem:[#allocation9 + $0x20] sm:$0xff] }
 0x273   : > { %1201 = vmatmul.msk.bf16.vlgmr.msrb.gmra.mxu3 %vm619_vm2, %v631_v46  ;;  %v1270_v46 = vld [vmem:[#allocation9 + $0x10] sm:$0xff] }
 0x274   : > { %797 = vmatpush.bf16.xpose.msrb.mxu3 %v788_v47  ;;  %915 = vmatpush.bf16.msrb.mxu1 %v1272_v44 }
 0x278   : > { %916 = vmatpush.bf16.msrb.mxu1 %v1271_v45 }
 0x27a   : > { %v719_v48 = vpop.permute.xlu0 %718 }
 0x27b   : > { %1204 = vmatmul.msk.bf16.vlgmr.msrb.gmra.mxu2 %vm599_vm0, %v719_v48 }
 0x27c   : > { %917 = vmatpush.bf16.msrb.mxu1 %v1270_v46 }
 0x283   : > { %1202 = vmatmul.msk.bf16.vlgmr.msra.gmra.mxu3 %vm599_vm0, %v655_v49  ;;  %v1269_v49 = vld [vmem:[#allocation9 + $0x8] sm:$0xff] }
 0x284   : > { %918 = vmatpush.bf16.msrb.mxu1 %v1269_v49 }
 0x293   : > { %1206 = vmatmul.msk.bf16.vlgmr.msrb.gmra.mxu3 %vm599_vm0, %v781_v50  ;;  %v1268_v50 = vld [vmem:[#allocation9] sm:$0xff] }
 0x294   : > { %919 = vmatpush.bf16.msrb.mxu1 %v1268_v50 }
 0x2f6   : > { %v648_v51 = vpop.f32.mrf.mxu3 }
 0x2f7   : > { %652 = vst.msk [vmem:[#allocation2] sm:$0xff] %vm599_vm0, %v648_v51 }
 0x2fe   : > { %v650_v52 = vpop.f32.mrf.mxu3  ;;  %v737_v53 = vpop.f32.mrf.mxu2 }
 0x2ff   : > { %v738_v54 = vadd.f32 %v737_v53, %v386_v32 }
 0x301   : > { %v741_v55 = vsel %vm619_vm2, %v738_v54, -inf }
 0x302   : > { %742 = vmax.xlane.f32.xlu1 %v741_v55 }
 0x306   : > { %v674_v56 = vpop.f32.mrf.mxu3  ;;  %v739_v57 = vpop.f32.mrf.mxu2 }
 0x307   : > { %v675_v58 = vadd.f32 %v674_v56, %v386_v32 }
 0x309   : > { %v678_v59 = vsel %vm619_vm2, %v675_v58, -inf }
 0x30a   : > { %679 = vmax.xlane.f32.xlu2 %v678_v59  ;;  %v1631_v59 = vmov 128.0  }
 0x30e   : > { %v676_v60 = vpop.f32.mrf.mxu3 }
 0x316   : > { %v799_v61 = vpop.f32.mrf.mxu3 }
 0x317   : > { %v800_v63 = vadd.f32 %v799_v61, %v386_v32 }
 0x319   : > { %v803_v0 = vsel %vm619_vm2, %v800_v63, -inf }
 0x31a   : > { %804 = vmax.xlane.f32.xlu0 %v803_v0 }
 0x31e   : > { %v801_v1 = vpop.f32.mrf.mxu3 }
 0x32e   : > { %753 = vrot.lane.b32.xlu0 %v1827_v26, %s1628_s1 }
 0x375   : > { %v743_v2 = vpop.xlane.xlu1 %742 }
 0x376   : > { %v744_v3 = vsub.f32 %v738_v54, %v743_v2  ;;  %v1371_v54 = vld [vmem:[%s1912_s4] ss:$0 sm:$0xff] }
 0x378   : > { %v745_v4 = vmul.f32 1.442695, %v744_v3 }
 0x37a   : > { %1378 = vpow2.f32 %v745_v4 }
 0x37d   : > { %v680_v5 = vpop.xlane.xlu2 %679 }
 0x37e   : > { %v681_v6 = vsub.f32 %v675_v58, %v680_v5 }
 0x380   : > { %v1379_v7 = vpop.eup %1378  ;;  %v682_v8 = vmul.f32 1.442695, %v681_v6 }
 0x381   : > { %v747_v9 = vsel %vm619_vm2, %v1379_v7, 0.0 }
 0x382   : > { %1380 = vpow2.f32 %v682_v8  ;;  %748 = vadd.xlane.f32.xlu1 %v747_v9 }
 0x388   : > { %v1381_v10 = vpop.eup %1380 }
 0x389   : > { %v684_v11 = vsel %vm619_vm2, %v1381_v10, 0.0 }
 0x38a   : > { %685 = vadd.xlane.f32.xlu2 %v684_v11 }
 0x38d   : > { %v805_v12 = vpop.xlane.xlu0 %804 }
 0x38e   : > { %v806_v13 = vsub.f32 %v800_v63, %v805_v12 }
 0x390   : > { %v807_v14 = vmul.f32 1.442695, %v806_v13 }
 0x392   : > { %1382 = vpow2.f32 %v807_v14 }
 0x398   : > { %v1383_v15 = vpop.eup %1382 }
 0x399   : > { %v809_v16 = vsel %vm619_vm2, %v1383_v15, 0.0 }
 0x39a   : > { %810 = vadd.xlane.f32.xlu1 %v809_v16 }
 0x3a0   : > { %v754_v17 = vpop.permute.xlu0 %753 }
 0x3a1   : > { %v759_v18 = vsel %vm635_vm1, %v754_v17, 0 }
 0x3a2   : > { %691 = vrot.lane.b32.xlu2 %v1827_v26, %s1629_s3  ;;  %768 = vmatpush.bf16.msra.mxu2 %v759_v18  ;;  %v1373_v18 = vld [vmem:[%s1914_s6] ss:$0 sm:$0xff] }
 0x3b3   : > { %815 = vrot.lane.b32.xlu1 %v1827_v26, %s1630_s13 }
 0x3f5   : > { %v749_v19 = vpop.xlane.xlu1 %748 }
 0x3f6   : > { %1384 = vrcp.f32 %v749_v19 }
 0x3fc   : > { %v1385_v20 = vpop.eup %1384 }
 0x3fd   : > { %v751_v21 = vmul.f32 %v1385_v20, %v1379_v7  ;;  %v686_v22 = vpop.xlane.xlu2 %685 }
 0x3fe   : > { %1386 = vrcp.f32 %v686_v22 }
 0x3ff   : > { %v752_v23 = vpack.c.bf16 %v751_v21, %v751_v21 }
 0x401   : > { %1205 = vmatmul.msk.bf16.vlgmr.msra.gmra.mxu2 %vm619_vm2, %v752_v23 }
 0x404   : > { %v1387_v24 = vpop.eup %1386 }
 0x405   : > { %v688_v25 = vmul.f32 %v1387_v24, %v1381_v10  ;;  %v692_v27 = vpop.permute.xlu2 %691 }
 0x406   : > { %v697_v28 = vsel %vm635_vm1, %v692_v27, 0 }
 0x407   : > { %706 = vmatpush.bf16.msrb.mxu0 %v697_v28  ;;  %v689_v29 = vpack.c.bf16 %v688_v25, %v688_v25 }
 0x40a   : > { %1203 = vmatmul.msk.bf16.vlgmr.msrb.gmra.mxu0 %vm619_vm2, %v689_v29 }
 0x40d   : > { %v811_v30 = vpop.xlane.xlu1 %810 }
 0x40e   : > { %1388 = vrcp.f32 %v811_v30 }
 0x40f   : > { %1390 = vrcp.f32 %v1631_v59 }
 0x414   : > { %v1389_v26 = vpop.eup %1388 }
 0x415   : > { %v813_v31 = vmul.f32 %v1389_v26, %v1383_v15  ;;  %v1391_v60 = vpop.eup %1390  ;;  %v1372_v15 = vld [vmem:[%s1913_s5] ss:$0 sm:$0xff] }
 0x416   : > { %v929_v61 = vmul.f32 128.0, %v1391_v60  ;;  %vm933_vm6 = vweird.f32 %v1391_v60 }
 0x417   : > { %v814_v34 = vpack.c.bf16 %v813_v31, %v813_v31 }
 0x418   : > { %v930_v63 = vsub.f32 1.0, %v929_v61 }
 0x41a   : > { %v931_v0 = vmul.f32 %v1391_v60, %v930_v63 }
 0x41c   : > { %v932_v1 = vadd.f32 %v1391_v60, %v931_v0 }
 0x41e   : > { %v934_v2 = vsel %vm933_vm6, %v1391_v60, %v932_v1 }
 0x425   : > { %v816_v32 = vpop.permute.xlu1 %815 }
 0x426   : > { %v821_v33 = vsel %vm635_vm1, %v816_v32, 0 }
 0x427   : > { %830 = vmatpush.bf16.msra.mxu0 %v821_v33 }
 0x42a   : > { %1207 = vmatmul.msk.bf16.vlgmr.msra.gmra.mxu0 %vm619_vm2, %v814_v34 }
 0x484   : > { %v770_v35 = vpop.f32.mrf.mxu2 }
 0x487   : > { %v708_v36 = vpop.f32.mrf.mxu0 }
 0x488   : > { %713 = vrot.lane.b32.xlu2 %v708_v36, %s1630_s13 }
 0x48c   : > { %v772_v37 = vpop.f32.mrf.mxu2 }
 0x48f   : > { %v710_v38 = vpop.f32.mrf.mxu0 }
 0x490   : > { %775 = vrot.lane.b32.xlu2 %v770_v35, %s1628_s1  ;;  %s979_s1 = sshll.u32 %s975_s17, 4  ;;  %s980_s1 = int_to_ptr.hbm [resolvable:$true] %s979_s1 }
 0x491   : > { %s1558_s13 = sshra.s32 %s980_s1, 4  ;;  %s1559_s13 = int_to_ptr.hbm [resolvable:$true] %s1558_s13 }
 0x492   : > { %s1560_s19 = scalar_lea.hbm %s1559_s13, 8  ;;  %p1565_p12 = scmp.lt.s32.totalorder %s1559_s13, %s1916_s8 }
 0x493   : > { %p1561_p1 = scmp.ne.s32.totalorder %s1559_s13, %s1560_s19  ;;  %p1566_p7 = scmp.lt.s32.totalorder %s1564_s21, %s1560_s19 }
 0x495   : > { %p1562_p3 = pnand %p1561_p1, %p1764_p4  ;;  %p1567_p8 = por %p1566_p7, %p1565_p12 }
 0x497   : > { %p1563_p5 = pneg %p1562_p3 }
 0x499   : > { %p1568_p9 = pnand %p1567_p8, %p1563_p5 }
 0x4a7   : > { %v832_v39 = vpop.f32.mrf.mxu0 }
 0x4a8   : > { %837 = vrot.lane.b32.xlu0 %v832_v39, %s1629_s3  ;;  %s965_s3 = scalar_lea.sflag [#allocation5], %s1795_s9 }
 0x4af   : > { %v834_v40 = vpop.f32.mrf.mxu0 }
 0x4e2   : > { %v714_v47 = vpop.permute.xlu2 %713 }
 0x4e3   : > { %717 = vst.msk [vmem:[#allocation2] sm:$0xff] %vm716_vm3, %v714_v47 }
 0x4ea   : > { %v776_v48 = vpop.permute.xlu2 %775 }
 0x4eb   : > { %779 = vst.msk [vmem:[#allocation2] sm:$0xff] %vm778_vm4, %v776_v48 }
 0x51a   : > { %v838_v51 = vpop.permute.xlu0 %837 }
 0x51b   : > { %841 = vst.msk [vmem:[#allocation2] sm:$0xff] %vm840_vm5, %v838_v51 }
 0x522   : > { %v842_v52 = vld [vmem:[#allocation2] sm:$0xff] }
 0x523   : > { %v843_v53 = vpack.c.bf16 %v842_v52, %v842_v52 }
 0x525   : > { %920 = vmatmul.bf16.vlgmr.msrb.gmra.mxu1 %v843_v53 }
 0x5a2   : > { %v921_v55 = vpop.f32.mrf.mxu1 }
 0x5a3   : > { %v922_v56 = vadd.f32 %v1371_v54, %v921_v55 }
 0x5a5   : > { %v925_v57 = vadd.f32 %v922_v56, %v1816_v62 }
 0x5a7   : > { %926 = vadd.xlane.f32.xlu2 %v925_v57 }
 0x5aa   : > { %v923_v58 = vpop.f32.mrf.mxu1 }
 0x61a   : > { %v927_v3 = vpop.xlane.xlu2 %926 }
 0x61b   : > { %v935_v4 = vmul.f32 %v934_v2, %v927_v3 }
 0x61d   : > { %v936_v5 = vsub.f32 %v925_v57, %v935_v4 }
 0x61f   : > { %v937_v6 = vmul.f32 %v936_v5, %v936_v5 }
 0x621   : > { %938 = vadd.xlane.f32.xlu0 %v937_v6 }
 0x694   : > { %v939_v7 = vpop.xlane.xlu0 %938 }
 0x695   : > { %v940_v8 = vmul.f32 %v939_v7, %v934_v2 }
 0x697   : > { %v941_v62 = vadd.f32 1e-05, %v940_v8 }
 0x699   : > { %1392 = vrsqrt.f32 %v941_v62  ;;  %vm948_vm8 = vweird.f32 %v941_v62 }
 0x69f   : > { %v1393_v9 = vpop.eup %1392 }
 0x6a0   : > { %v943_v10 = vmul.f32 %v1393_v9, %v941_v62  ;;  %vm949_vm7 = vweird.f32 %v1393_v9 }
 0x6a1   : > { %vm950_vm9 = vmor %vm948_vm8, %vm949_vm7 }
 0x6a2   : > { %v944_v11 = vmul.f32 %v1393_v9, %v943_v10 }
 0x6a4   : > { %v945_v12 = vmul.f32 0.5, %v944_v11 }
 0x6a6   : > { %v946_v13 = vsub.f32 1.5, %v945_v12 }
 0x6a8   : > { %v947_v14 = vmul.f32 %v1393_v9, %v946_v13 }
 0x6aa   : > { %v951_v16 = vsel %vm950_vm9, %v1393_v9, %v947_v14 }
 0x6ab   : > { %v952_v17 = vmul.f32 %v951_v16, %v936_v5 }
 0x6ad   : > { %v957_v19 = vmul.f32 %v1372_v15, %v952_v17 }
 0x6af   : > { %v962_v20 = vadd.f32 %v1373_v18, %v957_v19 }
 0x6b1   : > { %963 = vst [vmem:[%s384_s12] sm:$0xff] %v962_v20 }
 0x6b2   : > { %1571 = shalt.err (!%p1568_p9)
}
 0x6b3   : > { %1294 = dma.vmem_to_hbm [thread:$0]  (%p1764_p4), %s978_s2, 128, %s980_s1, %s965_s3  }
 0x6b4 PF: > { %s991_s9 = sand.u32 1, %s1606_s27   ;;  %p1930_p10 = scmp.ge.s32.totalorder %s1618_s30, 2 }
 0x6b5   : > { %s992_s15 = scalar_lea.sflag [#allocation5], %s991_s9 }
 0x6b6   : > { %p1314_p13 = pnand %p1930_p10, %p1768_p6 }
 0x6b8   : > { %p1315_p11 = pneg %p1314_p13 }
 0x6ba   : > { %1601 = dma.done.wait (%p1315_p11), %s992_s15, 128  }
 0x6bb   : > { %1603 = vsyncadd (%p1315_p11), %s992_s15, 4294967168  ;;  %p23_p0 = scmp.ge.s32.totalorder %s1738_s22, 4   ;;  %s1931_s27 = smov %s1610_s28 }
 0x6bc   : > { %s1932_s28 = smov %s1614_s29  ;;  %s1933_s29 = smov %s1749_s25 }
 0x6bd   : > { %s1934_s30 = smov %s1738_s22  ;;  %25 = sbr.rel (!%p23_p0) target bundleno = 11 (0xb), region = 113 }
 0x6c2   :  { %998 = vsyncpa [#allocation4], 1 }
 0x6c3   :  { %1000 = vsyncpa [#allocation4 + $0x1], 1 }
 0x6c4   :  { %1001 = vsyncpa [#allocation7], 1 }
 0x6c5   :  { %1002 = vsyncpa [#allocation10], 1 }
 0x6c6   :  { %1003 = vsyncpa [#allocation5], 1 }
 0x6c7   :  { %1005 = vsyncpa [#allocation5 + $0x1], 1 }

</bundles_post_ra>
